<compile_context>
chip_gen: v7x
topology: tpu7x:2x2x1
jax: 0.10.0
libtpu: 0.0.40
codegen_flags: <defaults>
</compile_context>

<pallas_src>
import functools

import jax
import jax.numpy as jnp
from jax import lax
from jax.experimental import pallas as pl
from jax.experimental.pallas import tpu as pltpu


def _spatial_attention_kernel(mask_ref, x_ref, w1_ref, b1_ref, s1_ref, t1_ref,
                              wd_ref, bd_ref, sd_ref, td_ref,
                              wl_ref, bl_ref, o_ref, *, num_layers, width):
    # x_ref:   (C, cols)          cols = images_per_block * H * W   (lane axis)
    # mask_ref:(9, cols)          boundary masks for the 9 dilated taps
    # w1_ref:  (Crp, C)  wd_ref: (L, Crp, 9*Crp)  wl_ref: (Crp, 1)
    cols = x_ref.shape[1]

    x = x_ref[...].astype(jnp.float32)                       # (C, cols)
    masks = mask_ref[...]                                     # (9, cols)

    # conv_reduce_1 (1x1 conv == channel matmul) + folded BN + ReLU
    y = jnp.dot(w1_ref[...], x, preferred_element_type=jnp.float32)
    y = jnp.maximum((y + b1_ref[...]) * s1_ref[...] + t1_ref[...], 0.0)

    # tap offsets for 3x3 conv, dilation=2, padding=2 ("same" spatial size)
    offsets = [2 * (kh - 1) * width + 2 * (kw - 1)
               for kh in range(3) for kw in range(3)]

    for l in range(num_layers):
        # Build the (9*Crp, cols) tap matrix with lane rolls + masks, then one dot.
        taps = []
        for t, off in enumerate(offsets):
            rolled = y if off == 0 else pltpu.roll(y, shift=(-off) % cols, axis=1)
            taps.append(rolled * masks[t:t + 1, :])
        tap_mat = jnp.concatenate(taps, axis=0)               # (9*Crp, cols)
        z = jnp.dot(wd_ref[l], tap_mat, preferred_element_type=jnp.float32)
        y = jnp.maximum((z + bd_ref[l]) * sd_ref[l] + td_ref[l], 0.0)

    # last_conv_reduce (1x1 conv -> 1 channel): sublane reduction, lane-dense store.
    res = jnp.sum(y * wl_ref[...], axis=0, keepdims=True) + bl_ref[...]
    o_ref[...] = res.astype(o_ref.dtype)


def spatial_attention(x_nchw, params, *, num_layers):
    N, C, H, W = x_nchw.shape
    HW = H * W
    Cr = params['w1'].shape[1]
    L = num_layers
    Crp = ((Cr + 7) // 8) * 8              # pad reduced channels to a sublane multiple

    # Images per grid step: fold batch images onto the lane axis to amortize the
    # ~0.35us/step grid overhead (target >= ~1024 lane columns per block).
    nb = N
    if HW % 128 == 0:
        target = max(1, 1024 // HW)
        for cand in range(min(N, target), 0, -1):
            if N % cand == 0:
                nb = cand
                break
    cols_blk = nb * HW

    def pad_to(a, axis, size):
        pw = [(0, 0)] * a.ndim
        pw[axis] = (0, size - a.shape[axis])
        return jnp.pad(a, pw)

    # NCHW -> (C, N*H*W): spatial (and batch) on the lane axis, channels on sublanes.
    x_cols = jnp.transpose(x_nchw.reshape(N, C, HW), (1, 0, 2)).reshape(C, N * HW)

    # Kernel-friendly weight layouts (zero-padded Cr -> Crp rows are inert).
    w1t = pad_to(params['w1'].T, 0, Crp)                               # (Crp, C)
    b1 = pad_to(params['b1'].reshape(Cr, 1), 0, Crp)                   # (Crp, 1)
    s1 = pad_to(params['s1'].reshape(Cr, 1), 0, Crp)
    t1 = pad_to(params['t1'].reshape(Cr, 1), 0, Crp)

    wd_t = jnp.transpose(params['wd'], (0, 4, 1, 2, 3))                # (L,Crout,3,3,Crin)
    wd_t = pad_to(pad_to(wd_t, 1, Crp), 4, Crp)                        # (L,Crp,3,3,Crp)
    wd_slab = wd_t.reshape(L, Crp, 9 * Crp)                            # one fused slab/layer

    bd = pad_to(params['bd'].reshape(L, Cr, 1), 1, Crp)
    sd = pad_to(params['sd'].reshape(L, Cr, 1), 1, Crp)
    td = pad_to(params['td'].reshape(L, Cr, 1), 1, Crp)

    wl = pad_to(params['wl'].reshape(Cr, 1), 0, Crp)                   # (Crp, 1)
    bl = params['bl'].reshape(1, 1)

    # Boundary masks for the 9 dilated taps (depend only on within-image position).
    hh = jnp.arange(H)
    ww = jnp.arange(W)
    mask_rows = []
    for kh in range(3):
        dh = 2 * (kh - 1)
        for kw in range(3):
            dw = 2 * (kw - 1)
            mh = (hh + dh >= 0) & (hh + dh < H)
            mw = (ww + dw >= 0) & (ww + dw < W)
            mask_rows.append((mh[:, None] & mw[None, :]).reshape(HW))
    masks = jnp.tile(jnp.stack(mask_rows).astype(jnp.float32), (1, nb))  # (9, cols_blk)

    kernel = functools.partial(_spatial_attention_kernel, num_layers=L, width=W)

    out_cols = pl.pallas_call(
        kernel,
        out_shape=jax.ShapeDtypeStruct((1, N * HW), x_nchw.dtype),
        grid_spec=pltpu.PrefetchScalarGridSpec(
            num_scalar_prefetch=0,
            grid=(N // nb,),
            in_specs=[
                pl.BlockSpec((9, cols_blk), lambda n: (0, 0)),          # masks (resident)
                pl.BlockSpec((C, cols_blk), lambda n: (0, n)),          # x columns block
                pl.BlockSpec((Crp, C), lambda n: (0, 0)),
                pl.BlockSpec((Crp, 1), lambda n: (0, 0)),
                pl.BlockSpec((Crp, 1), lambda n: (0, 0)),
                pl.BlockSpec((Crp, 1), lambda n: (0, 0)),
                pl.BlockSpec((L, Crp, 9 * Crp), lambda n: (0, 0, 0)),   # fused conv slabs
                pl.BlockSpec((L, Crp, 1), lambda n: (0, 0, 0)),
                pl.BlockSpec((L, Crp, 1), lambda n: (0, 0, 0)),
                pl.BlockSpec((L, Crp, 1), lambda n: (0, 0, 0)),
                pl.BlockSpec((Crp, 1), lambda n: (0, 0)),
                pl.BlockSpec((1, 1), lambda n: (0, 0)),
            ],
            out_specs=pl.BlockSpec((1, cols_blk), lambda n: (0, n)),    # lane-dense output
        ),
        compiler_params=pltpu.CompilerParams(
            dimension_semantics=("parallel",)),                         # 2 TCs on v7x
    )(masks, x_cols, w1t, b1, s1, t1, wd_slab, bd, sd, td, wl, bl)

    # Single-channel attention map -> NCHW, expand_as(x) broadcast done in XLA.
    res = out_cols.reshape(N, 1, H, W)
    return jnp.broadcast_to(res, (N, C, H, W))


# ---------------------------------------------------------------------------
# pure-JAX reference (for correctness check only)
# ---------------------------------------------------------------------------
def reference_forward(x_nchw, params, *, num_layers):
    N, C, H, W = x_nchw.shape
    Cr = params['w1'].shape[1]
    dn = ('NHWC', 'HWIO', 'NHWC')
    x = jnp.transpose(x_nchw, (0, 2, 3, 1))
    y = lax.conv_general_dilated(x, params['w1'].reshape(1, 1, C, Cr),
                                 (1, 1), 'VALID', dimension_numbers=dn)
    y = y + params['b1'].reshape(1, 1, 1, Cr)
    y = jnp.maximum(y * params['s1'].reshape(1, 1, 1, Cr)
                    + params['t1'].reshape(1, 1, 1, Cr), 0.0)
    for l in range(num_layers):
        y = lax.conv_general_dilated(y, params['wd'][l], (1, 1),
                                     ((2, 2), (2, 2)), rhs_dilation=(2, 2),
                                     dimension_numbers=dn)
        y = y + params['bd'][l].reshape(1, 1, 1, Cr)
        y = jnp.maximum(y * params['sd'][l].reshape(1, 1, 1, Cr)
                        + params['td'][l].reshape(1, 1, 1, Cr), 0.0)
    res = lax.conv_general_dilated(y, params['wl'].reshape(1, 1, Cr, 1),
                                   (1, 1), 'VALID', dimension_numbers=dn)
    res = res + params['bl'].reshape(1, 1, 1, 1)
    res = jnp.broadcast_to(res, x.shape)                     # expand_as(x)
    return jnp.transpose(res, (0, 3, 1, 2))


def make_params(key, channel, channel_reduction, num_layers):
    C = channel
    Cr = channel // channel_reduction
    L = num_layers
    eps = 1e-5
    ks = jax.random.split(key, 8)

    def bn_fold(k, n):
        kg, kb, km, kv = jax.random.split(k, 4)
        gamma = 1.0 + 0.1 * jax.random.normal(kg, (n,), jnp.float32)
        beta = 0.1 * jax.random.normal(kb, (n,), jnp.float32)
        mean = 0.1 * jax.random.normal(km, (n,), jnp.float32)
        var = 0.9 + 0.1 * jnp.abs(jax.random.normal(kv, (n,), jnp.float32))
        scale = gamma / jnp.sqrt(var + eps)
        shift = beta - mean * scale
        return scale, shift

    s1, t1 = bn_fold(ks[2], Cr)
    sd_list, td_list = [], []
    for l in range(L):
        s, t = bn_fold(jax.random.fold_in(ks[5], l), Cr)
        sd_list.append(s)
        td_list.append(t)

    return {
        'w1': 0.3 * jax.random.normal(ks[0], (C, Cr), jnp.float32),
        'b1': 0.1 * jax.random.normal(ks[1], (Cr,), jnp.float32),
        's1': s1,
        't1': t1,
        'wd': 0.2 * jax.random.normal(ks[3], (L, 3, 3, Cr, Cr), jnp.float32),
        'bd': 0.1 * jax.random.normal(ks[4], (L, Cr), jnp.float32),
        'sd': jnp.stack(sd_list),
        'td': jnp.stack(td_list),
        'wl': 0.3 * jax.random.normal(ks[6], (Cr,), jnp.float32),
        'bl': 0.1 * jax.random.normal(ks[7], (), jnp.float32),
    }


if __name__ == "__main__":
    channel, channel_reduction, num_layers = 10, 2, 3
    N, H, W = 2, 16, 16

    key = jax.random.PRNGKey(0)
    kx, kp = jax.random.split(key)
    x = jax.random.normal(kx, (N, channel, H, W), jnp.float32)   # NCHW, like PyTorch
    params = make_params(kp, channel, channel_reduction, num_layers)

    out = jax.block_until_ready(spatial_attention(x, params, num_layers=num_layers))
    ref = jax.block_until_ready(reference_forward(x, params, num_layers=num_layers))

    assert out.shape == x.shape, (out.shape, x.shape)
    max_err = float(jnp.max(jnp.abs(out - ref)))
    assert jnp.allclose(out, ref, atol=2e-4, rtol=2e-4), max_err

    print("KERNEL_OK")
</pallas_src>

<mosaic_0001>
module attributes {stable_mosaic.version = 11 : i64} {
  func.func @_spatial_attention_kernel(%arg0: i32, %arg1: memref<9x512xf32, #tpu.memory_space<vmem>>, %arg2: memref<10x512xf32, #tpu.memory_space<vmem>>, %arg3: memref<8x10xf32, #tpu.memory_space<vmem>>, %arg4: memref<8x1xf32, #tpu.memory_space<vmem>>, %arg5: memref<8x1xf32, #tpu.memory_space<vmem>>, %arg6: memref<8x1xf32, #tpu.memory_space<vmem>>, %arg7: memref<3x8x72xf32, #tpu.memory_space<vmem>>, %arg8: memref<3x8x1xf32, #tpu.memory_space<vmem>>, %arg9: memref<3x8x1xf32, #tpu.memory_space<vmem>>, %arg10: memref<3x8x1xf32, #tpu.memory_space<vmem>>, %arg11: memref<8x1xf32, #tpu.memory_space<vmem>>, %arg12: memref<1x1xf32, #tpu.memory_space<vmem>>, %arg13: memref<1x512xf32, #tpu.memory_space<vmem>>) attributes {dimension_semantics = [#tpu.dimension_semantics<parallel>], iteration_bounds = array<i64: 1>, scalar_prefetch = 0 : i64, scratch_operands = 0 : i64, tpu.core_type = #tpu.core_type<tc>, window_params = [{pipeline_mode = #tpu.pipeline_mode<synchronous>, transform_indices = @transform_0, window_bounds = array<i64: 9, 512>}, {transform_indices = @transform_1, window_bounds = array<i64: 10, 512>}, {pipeline_mode = #tpu.pipeline_mode<synchronous>, transform_indices = @transform_2, window_bounds = array<i64: 8, 10>}, {pipeline_mode = #tpu.pipeline_mode<synchronous>, transform_indices = @transform_3, window_bounds = array<i64: 8, 1>}, {pipeline_mode = #tpu.pipeline_mode<synchronous>, transform_indices = @transform_4, window_bounds = array<i64: 8, 1>}, {pipeline_mode = #tpu.pipeline_mode<synchronous>, transform_indices = @transform_5, window_bounds = array<i64: 8, 1>}, {pipeline_mode = #tpu.pipeline_mode<synchronous>, transform_indices = @transform_6, window_bounds = array<i64: 3, 8, 72>}, {pipeline_mode = #tpu.pipeline_mode<synchronous>, transform_indices = @transform_7, window_bounds = array<i64: 3, 8, 1>}, {pipeline_mode = #tpu.pipeline_mode<synchronous>, transform_indices = @transform_8, window_bounds = array<i64: 3, 8, 1>}, {pipeline_mode = #tpu.pipeline_mode<synchronous>, transform_indices = @transform_9, window_bounds = array<i64: 3, 8, 1>}, {pipeline_mode = #tpu.pipeline_mode<synchronous>, transform_indices = @transform_10, window_bounds = array<i64: 8, 1>}, {pipeline_mode = #tpu.pipeline_mode<synchronous>, transform_indices = @transform_11, window_bounds = array<i64: 1, 1>}, {transform_indices = @transform_12, window_bounds = array<i64: 1, 512>}]} {
    %c0 = arith.constant 0 : index
    %c0_0 = arith.constant 0 : index
    %0 = vector.load %arg2[%c0, %c0_0] : memref<10x512xf32, #tpu.memory_space<vmem>>, vector<10x512xf32>
    %c0_1 = arith.constant 0 : index
    %c0_2 = arith.constant 0 : index
    %1 = vector.load %arg1[%c0_1, %c0_2] : memref<9x512xf32, #tpu.memory_space<vmem>>, vector<9x512xf32>
    %c0_3 = arith.constant 0 : index
    %c0_4 = arith.constant 0 : index
    %2 = vector.load %arg3[%c0_3, %c0_4] : memref<8x10xf32, #tpu.memory_space<vmem>>, vector<8x10xf32>
    %cst = arith.constant dense<0.000000e+00> : vector<8x512xf32>
    %3 = tpu.matmul %2, %0, %cst {dimension_numbers = #tpu.dot_dimension_numbers<[1], [0], [0], [1], [0, 0, 1, 1], [], []>} : vector<8x10xf32>, vector<10x512xf32>, vector<8x512xf32> -> vector<8x512xf32>
    %c0_5 = arith.constant 0 : index
    %c0_6 = arith.constant 0 : index
    %4 = vector.load %arg4[%c0_5, %c0_6] : memref<8x1xf32, #tpu.memory_space<vmem>>, vector<8x1xf32>
    %5 = vector.broadcast %4 : vector<8x1xf32> to vector<8x512xf32>
    %6 = arith.addf %3, %5 : vector<8x512xf32>
    %c0_7 = arith.constant 0 : index
    %c0_8 = arith.constant 0 : index
    %7 = vector.load %arg5[%c0_7, %c0_8] : memref<8x1xf32, #tpu.memory_space<vmem>>, vector<8x1xf32>
    %8 = vector.broadcast %7 : vector<8x1xf32> to vector<8x512xf32>
    %9 = arith.mulf %6, %8 : vector<8x512xf32>
    %c0_9 = arith.constant 0 : index
    %c0_10 = arith.constant 0 : index
    %10 = vector.load %arg6[%c0_9, %c0_10] : memref<8x1xf32, #tpu.memory_space<vmem>>, vector<8x1xf32>
    %11 = vector.broadcast %10 : vector<8x1xf32> to vector<8x512xf32>
    %12 = arith.addf %9, %11 : vector<8x512xf32>
    %cst_11 = arith.constant 0.000000e+00 : f32
    %13 = vector.broadcast %cst_11 : f32 to vector<8x512xf32>
    %14 = arith.maximumf %12, %13 : vector<8x512xf32>
    %c34_i32 = arith.constant 34 : i32
    %15 = tpu.dynamic_rotate %14 by %c34_i32 dim 1 : vector<8x512xf32>, i32 -> vector<8x512xf32>
    %16 = vector.extract_strided_slice %1 {offsets = [0, 0], sizes = [1, 512], strides = [1, 1]} : vector<9x512xf32> to vector<1x512xf32>
    %17 = vector.broadcast %16 : vector<1x512xf32> to vector<8x512xf32>
    %18 = arith.mulf %15, %17 : vector<8x512xf32>
    %c32_i32 = arith.constant 32 : i32
    %19 = tpu.dynamic_rotate %14 by %c32_i32 dim 1 : vector<8x512xf32>, i32 -> vector<8x512xf32>
    %20 = vector.extract_strided_slice %1 {offsets = [1, 0], sizes = [1, 512], strides = [1, 1]} : vector<9x512xf32> to vector<1x512xf32>
    %21 = vector.broadcast %20 : vector<1x512xf32> to vector<8x512xf32>
    %22 = arith.mulf %19, %21 : vector<8x512xf32>
    %c30_i32 = arith.constant 30 : i32
    %23 = tpu.dynamic_rotate %14 by %c30_i32 dim 1 : vector<8x512xf32>, i32 -> vector<8x512xf32>
    %24 = vector.extract_strided_slice %1 {offsets = [2, 0], sizes = [1, 512], strides = [1, 1]} : vector<9x512xf32> to vector<1x512xf32>
    %25 = vector.broadcast %24 : vector<1x512xf32> to vector<8x512xf32>
    %26 = arith.mulf %23, %25 : vector<8x512xf32>
    %c2_i32 = arith.constant 2 : i32
    %27 = tpu.dynamic_rotate %14 by %c2_i32 dim 1 : vector<8x512xf32>, i32 -> vector<8x512xf32>
    %28 = vector.extract_strided_slice %1 {offsets = [3, 0], sizes = [1, 512], strides = [1, 1]} : vector<9x512xf32> to vector<1x512xf32>
    %29 = vector.broadcast %28 : vector<1x512xf32> to vector<8x512xf32>
    %30 = arith.mulf %27, %29 : vector<8x512xf32>
    %31 = vector.extract_strided_slice %1 {offsets = [4, 0], sizes = [1, 512], strides = [1, 1]} : vector<9x512xf32> to vector<1x512xf32>
    %32 = vector.broadcast %31 : vector<1x512xf32> to vector<8x512xf32>
    %33 = arith.mulf %14, %32 : vector<8x512xf32>
    %c510_i32 = arith.constant 510 : i32
    %34 = tpu.dynamic_rotate %14 by %c510_i32 dim 1 : vector<8x512xf32>, i32 -> vector<8x512xf32>
    %35 = vector.extract_strided_slice %1 {offsets = [5, 0], sizes = [1, 512], strides = [1, 1]} : vector<9x512xf32> to vector<1x512xf32>
    %36 = vector.broadcast %35 : vector<1x512xf32> to vector<8x512xf32>
    %37 = arith.mulf %34, %36 : vector<8x512xf32>
    %c482_i32 = arith.constant 482 : i32
    %38 = tpu.dynamic_rotate %14 by %c482_i32 dim 1 : vector<8x512xf32>, i32 -> vector<8x512xf32>
    %39 = vector.extract_strided_slice %1 {offsets = [6, 0], sizes = [1, 512], strides = [1, 1]} : vector<9x512xf32> to vector<1x512xf32>
    %40 = vector.broadcast %39 : vector<1x512xf32> to vector<8x512xf32>
    %41 = arith.mulf %38, %40 : vector<8x512xf32>
    %c480_i32 = arith.constant 480 : i32
    %42 = tpu.dynamic_rotate %14 by %c480_i32 dim 1 : vector<8x512xf32>, i32 -> vector<8x512xf32>
    %43 = vector.extract_strided_slice %1 {offsets = [7, 0], sizes = [1, 512], strides = [1, 1]} : vector<9x512xf32> to vector<1x512xf32>
    %44 = vector.broadcast %43 : vector<1x512xf32> to vector<8x512xf32>
    %45 = arith.mulf %42, %44 : vector<8x512xf32>
    %c478_i32 = arith.constant 478 : i32
    %46 = tpu.dynamic_rotate %14 by %c478_i32 dim 1 : vector<8x512xf32>, i32 -> vector<8x512xf32>
    %47 = vector.extract_strided_slice %1 {offsets = [8, 0], sizes = [1, 512], strides = [1, 1]} : vector<9x512xf32> to vector<1x512xf32>
    %48 = vector.broadcast %47 : vector<1x512xf32> to vector<8x512xf32>
    %49 = arith.mulf %46, %48 : vector<8x512xf32>
    %50 = tpu.concatenate %18, %22, %26, %30, %33, %37, %41, %45, %49 in 0 : vector<8x512xf32>, vector<8x512xf32>, vector<8x512xf32>, vector<8x512xf32>, vector<8x512xf32>, vector<8x512xf32>, vector<8x512xf32>, vector<8x512xf32>, vector<8x512xf32> -> vector<72x512xf32>
    %c0_12 = arith.constant 0 : index
    %c0_13 = arith.constant 0 : index
    %c0_14 = arith.constant 0 : index
    %51 = vector.load %arg7[%c0_12, %c0_13, %c0_14] : memref<3x8x72xf32, #tpu.memory_space<vmem>>, vector<1x8x72xf32>
    %52 = vector.shape_cast %51 : vector<1x8x72xf32> to vector<8x72xf32>
    %cst_15 = arith.constant dense<0.000000e+00> : vector<8x512xf32>
    %53 = tpu.matmul %52, %50, %cst_15 {dimension_numbers = #tpu.dot_dimension_numbers<[1], [0], [0], [1], [0, 0, 1, 1], [], []>} : vector<8x72xf32>, vector<72x512xf32>, vector<8x512xf32> -> vector<8x512xf32>
    %c0_16 = arith.constant 0 : index
    %c0_17 = arith.constant 0 : index
    %c0_18 = arith.constant 0 : index
    %54 = vector.load %arg8[%c0_16, %c0_17, %c0_18] : memref<3x8x1xf32, #tpu.memory_space<vmem>>, vector<1x8x1xf32>
    %55 = vector.shape_cast %54 : vector<1x8x1xf32> to vector<8x1xf32>
    %56 = vector.broadcast %55 : vector<8x1xf32> to vector<8x512xf32>
    %57 = arith.addf %53, %56 : vector<8x512xf32>
    %c0_19 = arith.constant 0 : index
    %c0_20 = arith.constant 0 : index
    %c0_21 = arith.constant 0 : index
    %58 = vector.load %arg9[%c0_19, %c0_20, %c0_21] : memref<3x8x1xf32, #tpu.memory_space<vmem>>, vector<1x8x1xf32>
    %59 = vector.shape_cast %58 : vector<1x8x1xf32> to vector<8x1xf32>
    %60 = vector.broadcast %59 : vector<8x1xf32> to vector<8x512xf32>
    %61 = arith.mulf %57, %60 : vector<8x512xf32>
    %c0_22 = arith.constant 0 : index
    %c0_23 = arith.constant 0 : index
    %c0_24 = arith.constant 0 : index
    %62 = vector.load %arg10[%c0_22, %c0_23, %c0_24] : memref<3x8x1xf32, #tpu.memory_space<vmem>>, vector<1x8x1xf32>
    %63 = vector.shape_cast %62 : vector<1x8x1xf32> to vector<8x1xf32>
    %64 = vector.broadcast %63 : vector<8x1xf32> to vector<8x512xf32>
    %65 = arith.addf %61, %64 : vector<8x512xf32>
    %cst_25 = arith.constant 0.000000e+00 : f32
    %66 = vector.broadcast %cst_25 : f32 to vector<8x512xf32>
    %67 = arith.maximumf %65, %66 : vector<8x512xf32>
    %c34_i32_26 = arith.constant 34 : i32
    %68 = tpu.dynamic_rotate %67 by %c34_i32_26 dim 1 : vector<8x512xf32>, i32 -> vector<8x512xf32>
    %69 = vector.extract_strided_slice %1 {offsets = [0, 0], sizes = [1, 512], strides = [1, 1]} : vector<9x512xf32> to vector<1x512xf32>
    %70 = vector.broadcast %69 : vector<1x512xf32> to vector<8x512xf32>
    %71 = arith.mulf %68, %70 : vector<8x512xf32>
    %c32_i32_27 = arith.constant 32 : i32
    %72 = tpu.dynamic_rotate %67 by %c32_i32_27 dim 1 : vector<8x512xf32>, i32 -> vector<8x512xf32>
    %73 = vector.extract_strided_slice %1 {offsets = [1, 0], sizes = [1, 512], strides = [1, 1]} : vector<9x512xf32> to vector<1x512xf32>
    %74 = vector.broadcast %73 : vector<1x512xf32> to vector<8x512xf32>
    %75 = arith.mulf %72, %74 : vector<8x512xf32>
    %c30_i32_28 = arith.constant 30 : i32
    %76 = tpu.dynamic_rotate %67 by %c30_i32_28 dim 1 : vector<8x512xf32>, i32 -> vector<8x512xf32>
    %77 = vector.extract_strided_slice %1 {offsets = [2, 0], sizes = [1, 512], strides = [1, 1]} : vector<9x512xf32> to vector<1x512xf32>
    %78 = vector.broadcast %77 : vector<1x512xf32> to vector<8x512xf32>
    %79 = arith.mulf %76, %78 : vector<8x512xf32>
    %c2_i32_29 = arith.constant 2 : i32
    %80 = tpu.dynamic_rotate %67 by %c2_i32_29 dim 1 : vector<8x512xf32>, i32 -> vector<8x512xf32>
    %81 = vector.extract_strided_slice %1 {offsets = [3, 0], sizes = [1, 512], strides = [1, 1]} : vector<9x512xf32> to vector<1x512xf32>
    %82 = vector.broadcast %81 : vector<1x512xf32> to vector<8x512xf32>
    %83 = arith.mulf %80, %82 : vector<8x512xf32>
    %84 = vector.extract_strided_slice %1 {offsets = [4, 0], sizes = [1, 512], strides = [1, 1]} : vector<9x512xf32> to vector<1x512xf32>
    %85 = vector.broadcast %84 : vector<1x512xf32> to vector<8x512xf32>
    %86 = arith.mulf %67, %85 : vector<8x512xf32>
    %c510_i32_30 = arith.constant 510 : i32
    %87 = tpu.dynamic_rotate %67 by %c510_i32_30 dim 1 : vector<8x512xf32>, i32 -> vector<8x512xf32>
    %88 = vector.extract_strided_slice %1 {offsets = [5, 0], sizes = [1, 512], strides = [1, 1]} : vector<9x512xf32> to vector<1x512xf32>
    %89 = vector.broadcast %88 : vector<1x512xf32> to vector<8x512xf32>
    %90 = arith.mulf %87, %89 : vector<8x512xf32>
    %c482_i32_31 = arith.constant 482 : i32
    %91 = tpu.dynamic_rotate %67 by %c482_i32_31 dim 1 : vector<8x512xf32>, i32 -> vector<8x512xf32>
    %92 = vector.extract_strided_slice %1 {offsets = [6, 0], sizes = [1, 512], strides = [1, 1]} : vector<9x512xf32> to vector<1x512xf32>
    %93 = vector.broadcast %92 : vector<1x512xf32> to vector<8x512xf32>
    %94 = arith.mulf %91, %93 : vector<8x512xf32>
    %c480_i32_32 = arith.constant 480 : i32
    %95 = tpu.dynamic_rotate %67 by %c480_i32_32 dim 1 : vector<8x512xf32>, i32 -> vector<8x512xf32>
    %96 = vector.extract_strided_slice %1 {offsets = [7, 0], sizes = [1, 512], strides = [1, 1]} : vector<9x512xf32> to vector<1x512xf32>
    %97 = vector.broadcast %96 : vector<1x512xf32> to vector<8x512xf32>
    %98 = arith.mulf %95, %97 : vector<8x512xf32>
    %c478_i32_33 = arith.constant 478 : i32
    %99 = tpu.dynamic_rotate %67 by %c478_i32_33 dim 1 : vector<8x512xf32>, i32 -> vector<8x512xf32>
    %100 = vector.extract_strided_slice %1 {offsets = [8, 0], sizes = [1, 512], strides = [1, 1]} : vector<9x512xf32> to vector<1x512xf32>
    %101 = vector.broadcast %100 : vector<1x512xf32> to vector<8x512xf32>
    %102 = arith.mulf %99, %101 : vector<8x512xf32>
    %103 = tpu.concatenate %71, %75, %79, %83, %86, %90, %94, %98, %102 in 0 : vector<8x512xf32>, vector<8x512xf32>, vector<8x512xf32>, vector<8x512xf32>, vector<8x512xf32>, vector<8x512xf32>, vector<8x512xf32>, vector<8x512xf32>, vector<8x512xf32> -> vector<72x512xf32>
    %c1 = arith.constant 1 : index
    %c0_34 = arith.constant 0 : index
    %c0_35 = arith.constant 0 : index
    %104 = vector.load %arg7[%c1, %c0_34, %c0_35] : memref<3x8x72xf32, #tpu.memory_space<vmem>>, vector<1x8x72xf32>
    %105 = vector.shape_cast %104 : vector<1x8x72xf32> to vector<8x72xf32>
    %cst_36 = arith.constant dense<0.000000e+00> : vector<8x512xf32>
    %106 = tpu.matmul %105, %103, %cst_36 {dimension_numbers = #tpu.dot_dimension_numbers<[1], [0], [0], [1], [0, 0, 1, 1], [], []>} : vector<8x72xf32>, vector<72x512xf32>, vector<8x512xf32> -> vector<8x512xf32>
    %c1_37 = arith.constant 1 : index
    %c0_38 = arith.constant 0 : index
    %c0_39 = arith.constant 0 : index
    %107 = vector.load %arg8[%c1_37, %c0_38, %c0_39] : memref<3x8x1xf32, #tpu.memory_space<vmem>>, vector<1x8x1xf32>
    %108 = vector.shape_cast %107 : vector<1x8x1xf32> to vector<8x1xf32>
    %109 = vector.broadcast %108 : vector<8x1xf32> to vector<8x512xf32>
    %110 = arith.addf %106, %109 : vector<8x512xf32>
    %c1_40 = arith.constant 1 : index
    %c0_41 = arith.constant 0 : index
    %c0_42 = arith.constant 0 : index
    %111 = vector.load %arg9[%c1_40, %c0_41, %c0_42] : memref<3x8x1xf32, #tpu.memory_space<vmem>>, vector<1x8x1xf32>
    %112 = vector.shape_cast %111 : vector<1x8x1xf32> to vector<8x1xf32>
    %113 = vector.broadcast %112 : vector<8x1xf32> to vector<8x512xf32>
    %114 = arith.mulf %110, %113 : vector<8x512xf32>
    %c1_43 = arith.constant 1 : index
    %c0_44 = arith.constant 0 : index
    %c0_45 = arith.constant 0 : index
    %115 = vector.load %arg10[%c1_43, %c0_44, %c0_45] : memref<3x8x1xf32, #tpu.memory_space<vmem>>, vector<1x8x1xf32>
    %116 = vector.shape_cast %115 : vector<1x8x1xf32> to vector<8x1xf32>
    %117 = vector.broadcast %116 : vector<8x1xf32> to vector<8x512xf32>
    %118 = arith.addf %114, %117 : vector<8x512xf32>
    %cst_46 = arith.constant 0.000000e+00 : f32
    %119 = vector.broadcast %cst_46 : f32 to vector<8x512xf32>
    %120 = arith.maximumf %118, %119 : vector<8x512xf32>
    %c34_i32_47 = arith.constant 34 : i32
    %121 = tpu.dynamic_rotate %120 by %c34_i32_47 dim 1 : vector<8x512xf32>, i32 -> vector<8x512xf32>
    %122 = vector.extract_strided_slice %1 {offsets = [0, 0], sizes = [1, 512], strides = [1, 1]} : vector<9x512xf32> to vector<1x512xf32>
    %123 = vector.broadcast %122 : vector<1x512xf32> to vector<8x512xf32>
    %124 = arith.mulf %121, %123 : vector<8x512xf32>
    %c32_i32_48 = arith.constant 32 : i32
    %125 = tpu.dynamic_rotate %120 by %c32_i32_48 dim 1 : vector<8x512xf32>, i32 -> vector<8x512xf32>
    %126 = vector.extract_strided_slice %1 {offsets = [1, 0], sizes = [1, 512], strides = [1, 1]} : vector<9x512xf32> to vector<1x512xf32>
    %127 = vector.broadcast %126 : vector<1x512xf32> to vector<8x512xf32>
    %128 = arith.mulf %125, %127 : vector<8x512xf32>
    %c30_i32_49 = arith.constant 30 : i32
    %129 = tpu.dynamic_rotate %120 by %c30_i32_49 dim 1 : vector<8x512xf32>, i32 -> vector<8x512xf32>
    %130 = vector.extract_strided_slice %1 {offsets = [2, 0], sizes = [1, 512], strides = [1, 1]} : vector<9x512xf32> to vector<1x512xf32>
    %131 = vector.broadcast %130 : vector<1x512xf32> to vector<8x512xf32>
    %132 = arith.mulf %129, %131 : vector<8x512xf32>
    %c2_i32_50 = arith.constant 2 : i32
    %133 = tpu.dynamic_rotate %120 by %c2_i32_50 dim 1 : vector<8x512xf32>, i32 -> vector<8x512xf32>
    %134 = vector.extract_strided_slice %1 {offsets = [3, 0], sizes = [1, 512], strides = [1, 1]} : vector<9x512xf32> to vector<1x512xf32>
    %135 = vector.broadcast %134 : vector<1x512xf32> to vector<8x512xf32>
    %136 = arith.mulf %133, %135 : vector<8x512xf32>
    %137 = vector.extract_strided_slice %1 {offsets = [4, 0], sizes = [1, 512], strides = [1, 1]} : vector<9x512xf32> to vector<1x512xf32>
    %138 = vector.broadcast %137 : vector<1x512xf32> to vector<8x512xf32>
    %139 = arith.mulf %120, %138 : vector<8x512xf32>
    %c510_i32_51 = arith.constant 510 : i32
    %140 = tpu.dynamic_rotate %120 by %c510_i32_51 dim 1 : vector<8x512xf32>, i32 -> vector<8x512xf32>
    %141 = vector.extract_strided_slice %1 {offsets = [5, 0], sizes = [1, 512], strides = [1, 1]} : vector<9x512xf32> to vector<1x512xf32>
    %142 = vector.broadcast %141 : vector<1x512xf32> to vector<8x512xf32>
    %143 = arith.mulf %140, %142 : vector<8x512xf32>
    %c482_i32_52 = arith.constant 482 : i32
    %144 = tpu.dynamic_rotate %120 by %c482_i32_52 dim 1 : vector<8x512xf32>, i32 -> vector<8x512xf32>
    %145 = vector.extract_strided_slice %1 {offsets = [6, 0], sizes = [1, 512], strides = [1, 1]} : vector<9x512xf32> to vector<1x512xf32>
    %146 = vector.broadcast %145 : vector<1x512xf32> to vector<8x512xf32>
    %147 = arith.mulf %144, %146 : vector<8x512xf32>
    %c480_i32_53 = arith.constant 480 : i32
    %148 = tpu.dynamic_rotate %120 by %c480_i32_53 dim 1 : vector<8x512xf32>, i32 -> vector<8x512xf32>
    %149 = vector.extract_strided_slice %1 {offsets = [7, 0], sizes = [1, 512], strides = [1, 1]} : vector<9x512xf32> to vector<1x512xf32>
    %150 = vector.broadcast %149 : vector<1x512xf32> to vector<8x512xf32>
    %151 = arith.mulf %148, %150 : vector<8x512xf32>
    %c478_i32_54 = arith.constant 478 : i32
    %152 = tpu.dynamic_rotate %120 by %c478_i32_54 dim 1 : vector<8x512xf32>, i32 -> vector<8x512xf32>
    %153 = vector.extract_strided_slice %1 {offsets = [8, 0], sizes = [1, 512], strides = [1, 1]} : vector<9x512xf32> to vector<1x512xf32>
    %154 = vector.broadcast %153 : vector<1x512xf32> to vector<8x512xf32>
    %155 = arith.mulf %152, %154 : vector<8x512xf32>
    %156 = tpu.concatenate %124, %128, %132, %136, %139, %143, %147, %151, %155 in 0 : vector<8x512xf32>, vector<8x512xf32>, vector<8x512xf32>, vector<8x512xf32>, vector<8x512xf32>, vector<8x512xf32>, vector<8x512xf32>, vector<8x512xf32>, vector<8x512xf32> -> vector<72x512xf32>
    %c2 = arith.constant 2 : index
    %c0_55 = arith.constant 0 : index
    %c0_56 = arith.constant 0 : index
    %157 = vector.load %arg7[%c2, %c0_55, %c0_56] : memref<3x8x72xf32, #tpu.memory_space<vmem>>, vector<1x8x72xf32>
    %158 = vector.shape_cast %157 : vector<1x8x72xf32> to vector<8x72xf32>
    %cst_57 = arith.constant dense<0.000000e+00> : vector<8x512xf32>
    %159 = tpu.matmul %158, %156, %cst_57 {dimension_numbers = #tpu.dot_dimension_numbers<[1], [0], [0], [1], [0, 0, 1, 1], [], []>} : vector<8x72xf32>, vector<72x512xf32>, vector<8x512xf32> -> vector<8x512xf32>
    %c2_58 = arith.constant 2 : index
    %c0_59 = arith.constant 0 : index
    %c0_60 = arith.constant 0 : index
    %160 = vector.load %arg8[%c2_58, %c0_59, %c0_60] : memref<3x8x1xf32, #tpu.memory_space<vmem>>, vector<1x8x1xf32>
    %161 = vector.shape_cast %160 : vector<1x8x1xf32> to vector<8x1xf32>
    %162 = vector.broadcast %161 : vector<8x1xf32> to vector<8x512xf32>
    %163 = arith.addf %159, %162 : vector<8x512xf32>
    %c2_61 = arith.constant 2 : index
    %c0_62 = arith.constant 0 : index
    %c0_63 = arith.constant 0 : index
    %164 = vector.load %arg9[%c2_61, %c0_62, %c0_63] : memref<3x8x1xf32, #tpu.memory_space<vmem>>, vector<1x8x1xf32>
    %165 = vector.shape_cast %164 : vector<1x8x1xf32> to vector<8x1xf32>
    %166 = vector.broadcast %165 : vector<8x1xf32> to vector<8x512xf32>
    %167 = arith.mulf %163, %166 : vector<8x512xf32>
    %c2_64 = arith.constant 2 : index
    %c0_65 = arith.constant 0 : index
    %c0_66 = arith.constant 0 : index
    %168 = vector.load %arg10[%c2_64, %c0_65, %c0_66] : memref<3x8x1xf32, #tpu.memory_space<vmem>>, vector<1x8x1xf32>
    %169 = vector.shape_cast %168 : vector<1x8x1xf32> to vector<8x1xf32>
    %170 = vector.broadcast %169 : vector<8x1xf32> to vector<8x512xf32>
    %171 = arith.addf %167, %170 : vector<8x512xf32>
    %cst_67 = arith.constant 0.000000e+00 : f32
    %172 = vector.broadcast %cst_67 : f32 to vector<8x512xf32>
    %173 = arith.maximumf %171, %172 : vector<8x512xf32>
    %c0_68 = arith.constant 0 : index
    %c0_69 = arith.constant 0 : index
    %174 = vector.load %arg11[%c0_68, %c0_69] : memref<8x1xf32, #tpu.memory_space<vmem>>, vector<8x1xf32>
    %175 = vector.broadcast %174 : vector<8x1xf32> to vector<8x512xf32>
    %176 = arith.mulf %173, %175 : vector<8x512xf32>
    %cst_70 = arith.constant dense<0.000000e+00> : vector<512xf32>
    %177 = vector.multi_reduction <add>, %176, %cst_70 [0] : vector<8x512xf32> to vector<512xf32>
    %178 = vector.shape_cast %177 : vector<512xf32> to vector<1x512xf32>
    %c0_71 = arith.constant 0 : index
    %c0_72 = arith.constant 0 : index
    %179 = vector.load %arg12[%c0_71, %c0_72] : memref<1x1xf32, #tpu.memory_space<vmem>>, vector<1x1xf32>
    %180 = vector.broadcast %179 : vector<1x1xf32> to vector<1x512xf32>
    %181 = arith.addf %178, %180 : vector<1x512xf32>
    %c0_73 = arith.constant 0 : index
    %c0_74 = arith.constant 0 : index
    %182 = vector.load %arg13[%c0_73, %c0_74] : memref<1x512xf32, #tpu.memory_space<vmem>>, vector<1x512xf32>
    tpu.vector_store %arg13[%c0_73, %c0_74], %181 {strides = array<i32>} : memref<1x512xf32, #tpu.memory_space<vmem>>, vector<1x512xf32>,
    return
  }
  func.func @transform_0(%arg0: i32) -> (i32, i32) {
    %c0_i32 = arith.constant 0 : i32
    %c0_i32_0 = arith.constant 0 : i32
    %c0_i32_1 = arith.constant 0 : i32
    return %c0_i32, %c0_i32_0 : i32, i32
  }
  func.func @transform_1(%arg0: i32) -> (i32, i32) {
    %c0_i32 = arith.constant 0 : i32
    %c0_i32_0 = arith.constant 0 : i32
    return %c0_i32, %arg0 : i32, i32
  }
  func.func @transform_2(%arg0: i32) -> (i32, i32) {
    %c0_i32 = arith.constant 0 : i32
    %c0_i32_0 = arith.constant 0 : i32
    %c0_i32_1 = arith.constant 0 : i32
    return %c0_i32, %c0_i32_0 : i32, i32
  }
  func.func @transform_3(%arg0: i32) -> (i32, i32) {
    %c0_i32 = arith.constant 0 : i32
    %c0_i32_0 = arith.constant 0 : i32
    %c0_i32_1 = arith.constant 0 : i32
    return %c0_i32, %c0_i32_0 : i32, i32
  }
  func.func @transform_4(%arg0: i32) -> (i32, i32) {
    %c0_i32 = arith.constant 0 : i32
    %c0_i32_0 = arith.constant 0 : i32
    %c0_i32_1 = arith.constant 0 : i32
    return %c0_i32, %c0_i32_0 : i32, i32
  }
  func.func @transform_5(%arg0: i32) -> (i32, i32) {
    %c0_i32 = arith.constant 0 : i32
    %c0_i32_0 = arith.constant 0 : i32
    %c0_i32_1 = arith.constant 0 : i32
    return %c0_i32, %c0_i32_0 : i32, i32
  }
  func.func @transform_6(%arg0: i32) -> (i32, i32, i32) {
    %c0_i32 = arith.constant 0 : i32
    %c0_i32_0 = arith.constant 0 : i32
    %c0_i32_1 = arith.constant 0 : i32
    %c0_i32_2 = arith.constant 0 : i32
    return %c0_i32, %c0_i32_0, %c0_i32_1 : i32, i32, i32
  }
  func.func @transform_7(%arg0: i32) -> (i32, i32, i32) {
    %c0_i32 = arith.constant 0 : i32
    %c0_i32_0 = arith.constant 0 : i32
    %c0_i32_1 = arith.constant 0 : i32
    %c0_i32_2 = arith.constant 0 : i32
    return %c0_i32, %c0_i32_0, %c0_i32_1 : i32, i32, i32
  }
  func.func @transform_8(%arg0: i32) -> (i32, i32, i32) {
    %c0_i32 = arith.constant 0 : i32
    %c0_i32_0 = arith.constant 0 : i32
    %c0_i32_1 = arith.constant 0 : i32
    %c0_i32_2 = arith.constant 0 : i32
    return %c0_i32, %c0_i32_0, %c0_i32_1 : i32, i32, i32
  }
  func.func @transform_9(%arg0: i32) -> (i32, i32, i32) {
    %c0_i32 = arith.constant 0 : i32
    %c0_i32_0 = arith.constant 0 : i32
    %c0_i32_1 = arith.constant 0 : i32
    %c0_i32_2 = arith.constant 0 : i32
    return %c0_i32, %c0_i32_0, %c0_i32_1 : i32, i32, i32
  }
  func.func @transform_10(%arg0: i32) -> (i32, i32) {
    %c0_i32 = arith.constant 0 : i32
    %c0_i32_0 = arith.constant 0 : i32
    %c0_i32_1 = arith.constant 0 : i32
    return %c0_i32, %c0_i32_0 : i32, i32
  }
  func.func @transform_11(%arg0: i32) -> (i32, i32) {
    %c0_i32 = arith.constant 0 : i32
    %c0_i32_0 = arith.constant 0 : i32
    %c0_i32_1 = arith.constant 0 : i32
    return %c0_i32, %c0_i32_0 : i32, i32
  }
  func.func @transform_12(%arg0: i32) -> (i32, i32) {
    %c0_i32 = arith.constant 0 : i32
    %c0_i32_0 = arith.constant 0 : i32
    return %c0_i32, %arg0 : i32, i32
  }
}

</mosaic_0001>

<bundles_post_ra>
// kernel: tpu_custom_call.1
= control target key start
LH: loop header
LB: loop body
LE: loop exit
PB: predicated region body
PF: predicated region fallthrough
CT: control target
= control target key end

     0   :  { %s2525_s0 = inlined_call_operand.vmem [shape: f32[9,512], index: 0, kind: input, shape index: {}]   ;;  %s2526_s1 = inlined_call_operand.hbm [shape: f32[10,512], index: 1, kind: input, shape index: {}]   ;;  %s2527_s2 = inlined_call_operand.vmem [shape: f32[8,10], index: 2, kind: input, shape index: {}]   ;;  %s2528_s3 = inlined_call_operand.vmem [shape: f32[8,1], index: 3, kind: input, shape index: {}]   ;;  %s2529_s4 = inlined_call_operand.vmem [shape: f32[8,1], index: 4, kind: input, shape index: {}]   ;;  %s2530_s5 = inlined_call_operand.vmem [shape: f32[8,1], index: 5, kind: input, shape index: {}]   ;;  %s2531_s6 = inlined_call_operand.vmem [shape: f32[3,8,72], index: 6, kind: input, shape index: {}]   ;;  %s2532_s7 = inlined_call_operand.vmem [shape: f32[3,8,1], index: 7, kind: input, shape index: {}]   ;;  %s2533_s8 = inlined_call_operand.vmem [shape: f32[3,8,1], index: 8, kind: input, shape index: {}]   ;;  %s2534_s9 = inlined_call_operand.vmem [shape: f32[3,8,1], index: 9, kind: input, shape index: {}]   ;;  %s2535_s10 = inlined_call_operand.vmem [shape: f32[8,1], index: 10, kind: input, shape index: {}]   ;;  %s2536_s11 = inlined_call_operand.<no memory space> [shape: f32[1,1], index: 11, kind: input, shape index: {}]   ;;  %s2537_s12 = inlined_call_operand.hbm [shape: f32[1,512], index: 12, kind: output, shape index: {}]  }
   0x1   :  { %v17_v0 = vstv %s2536_s11 }
   0x2   :  { %18 = vst [vmem:[#allocation2] sm:$0x1] %v17_v0 }
   0x3   :  { %19 = vsyncpa [#allocation4], 0 }
   0x4   :  { %20 = vsyncpa [#allocation5], 0  ;;  %s1645_s23 = smov [#allocation3]   ;;  %s1597_s27 = scalar_lea.hbm %s2526_s1, 1024 }
   0x5   :  { %s28_s24 = sshll.u32 %s1645_s23, 4  ;;  %p1598_p0 = scmp.ne.s32.totalorder %s2526_s1, %s1597_s27  ;;  %s29_s24 = int_to_ptr.vmem [resolvable:$true] %s28_s24 }
   0x6   :  { %p1601_p1 = scmp.lt.u32.totalorder %s1597_s27, %s2526_s1 }
   0x8   :  { %p1603_p2 = pnand %p1601_p1, %p1598_p0 }
   0xa   :  { %1606 = shalt.err (!%p1603_p2)
}
   0xb   :  { %s1607_s11 = scalar_lea.vmem %s29_s24, 1024  ;;  %p1612_p4 = scmp.lt.s32.totalorder %s29_s24, %s29_s24 }
   0xc   :  { %p1608_p3 = scmp.ne.s32.totalorder %s29_s24, %s1607_s11  ;;  %p1613_p5 = scmp.lt.s32.totalorder %s1607_s11, %s1607_s11 }
   0xe   :  { %p1614_p6 = por %p1613_p5, %p1612_p4 }
  0x10   :  { %p1615_p7 = pnand %p1614_p6, %p1608_p3 }
  0x12   :  { %1618 = shalt.err (!%p1615_p7)
}
  0x13   :  { %s1646_s14 = smov 512   ;;  %s1647_s15 = smov 32  }
  0x14   :  { %34 = dma.hbm_to_vmem [thread:$0]  %s2526_s1, 1024, %s29_s24, [#allocation4], %s1646_s14, %s1646_s14, %s1647_s15  }
  0x15   :  { %1641 = dma.done.wait [#allocation4], 1024  }
  0x16   :  { %1642 = vsyncadd [#allocation4], 4294966272  ;;  %v1648_v1 = vmov 0.0   ;;  %v1649_v2 = vmov 0   ;;  %vm85_vm0 = vcmask 1041408   ;;  %vm1650_vm1 = vmmov 1  }
  0x17   :  { %162 = vmatprep.mubr.f32.mxu0 %v1648_v1  ;;  %233 = vmatprep.mubr.f32.mxu1 %v1648_v1  ;;  %vm1743_vm2 = vmpackc.low %vm85_vm0, %vm1650_vm1  ;;  %v59_v4 = vld [vmem:[#allocation3 + $0x8] sm:$0xff]  ;;  %v61_v6 = vld [vmem:[#allocation3 + $0x18] sm:$0xff]  ;;  %vm81_vm3 = vcmask 80896   ;;  %s1654_s24 = smov 126   ;;  %s1655_s25 = smov 98   ;;  %v2538_v46 = vlaneseq  ;;  %vm557_vm12 = vcmask 588800  }
  0x18   :  { %1595 = vset.pattern.permute.xlu0 %v1649_v2  ;;  %1596 = vset.pattern.permute.xlu1 %v1649_v2  ;;  %v63_v5 = vld [vmem:[#allocation3 + $0x28] sm:$0x3]  ;;  %v65_v8 = vld [vmem:[#allocation3 + $0x38] sm:$0x3]  ;;  %v58_v9 = vld [vmem:[#allocation3] sm:$0xff]  ;;  %s1656_s26 = smov 96  }
  0x19   :  { %v1472_v7 = vpack.c.bf16 %v63_v5, %v59_v4  ;;  %v62_v10 = vld [vmem:[#allocation3 + $0x20] sm:$0x3]  ;;  %v1478_v11 = vpack.c.bf16 %v65_v8, %v61_v6  ;;  %v60_v13 = vld [vmem:[#allocation3 + $0x10] sm:$0xff]  ;;  %s1657_s27 = smov 94   ;;  %v1851_v48 = vand.u32 127, %v2538_v46  ;;  %v1854_v49 = vshrl.u32 %v2538_v46, 7 }
  0x1a   :  { %v1475_v12 = vpack.c.bf16 %v62_v10, %v58_v9  ;;  %v64_v14 = vld [vmem:[#allocation3 + $0x30] sm:$0x3]  ;;  %v75_v16 = vld [vmem:[%s2528_s3] sm:$0xff]  ;;  %v1864_v55 = vld [vmem:[%s2525_s0 + $0x8] sm:$0xff] }
  0x1b   :  { %1474 = vmatprep.subr.msk.bf16.mxu0 %vm1743_vm2, %v1472_v7  ;;  %v1481_v15 = vpack.c.bf16 %v64_v14, %v60_v13  ;;  %v250_v17 = vld [vmem:[%s2530_s5] sm:$0xff]  ;;  %1480 = vmatprep.subr.msk.bf16.mxu1 %vm1743_vm2, %v1478_v11  ;;  %s1653_s5 = smov 2   ;;  %v1857_v51 = vsub.s32 0, %v1854_v49  ;;  %v314_v52 = vsub.s32 1, %v1854_v49  ;;  %vm274_vm4 = vcmp.lt.s32.totalorder %v1851_v48, 34  ;;  %v1879_v60 = vld [vmem:[%s2525_s0 + $0x10] sm:$0xff] }
  0x1c   :  { %1477 = vmatpush1.bf16.msk.msra.mxu0 %vm1743_vm2, %v1475_v12  ;;  %v74_v18 = vld [vmem:[%s2527_s2] sm:$0xff]  ;;  %78 = vperm.xlu0 %1595, %v75_v16   ;;  %s1651_s2 = smov 34   ;;  %vm307_vm5 = vcmp.lt.s32.totalorder %v1851_v48, 32  ;;  %v1889_v62 = vld [vmem:[%s2525_s0 + $0x18] sm:$0xff]  ;;  %vm340_vm6 = vcmp.lt.s32.totalorder %v1851_v48, 30  ;;  %vm373_vm7 = vcmp.lt.s32.totalorder %v1851_v48, 2 }
  0x1d   :  { %1483 = vmatpush1.bf16.msk.msra.mxu1 %vm1743_vm2, %v1481_v15  ;;  %v240_v19 = vld [vmem:[%s2529_s4] sm:$0xff]  ;;  %253 = vperm.xlu1 %1596, %v250_v17   ;;  %s1652_s4 = smov 30   ;;  %v1868_v56 = vrot.slane %v1864_v55, %v1857_v51  ;;  %v1872_v57 = vrot.slane %v1864_v55, %v314_v52  ;;  %v1897_v2 = vrot.slane %v1889_v62, %v1857_v51  ;;  %vm426_vm8 = vcmp.lt.s32.totalorder %v1851_v48, 126 }
  0x1e   :  { %v551_v43 = vld [vmem:[%s2532_s7] sm:$0xff]  ;;  %v1902_v4 = vrot.slane %v1879_v60, %v314_v52  ;;  %v1910_v8 = vrot.slane %v1889_v62, %v314_v52  ;;  %v1914_v9 = vrot.slane %v1879_v60, %v1857_v51  ;;  %vm459_vm9 = vcmp.lt.s32.totalorder %v1851_v48, 98 }
  0x1f   :  { %1450 = vmatmul.mubr.msk.f32.vlgmr.msra.gmra.mrb[0].mxu0 %vm81_vm3, %v74_v18  ;;  %v703_v44 = vld [vmem:[%s2533_s8] sm:$0xff]  ;;  %vm492_vm10 = vcmp.lt.s32.totalorder %v1851_v48, 96  ;;  %vm525_vm11 = vcmp.lt.s32.totalorder %v1851_v48, 94 }
  0x20   :  { %1453 = vmatmul.mubr.msk.f32.vlgmr.msra.gmra.mrb[0].mxu1 %vm81_vm3, %v74_v18  ;;  %625 = vmatprep.mubr.f32.mxu0 %v1648_v1  ;;  %v713_v45 = vld [vmem:[%s2534_s9] sm:$0xff] }
  0x21   :  { %243 = vperm.xlu0 %1595, %v240_v19   ;;  %696 = vmatprep.mubr.f32.mxu1 %v1648_v1  ;;  %v1884_v61 = vld [vmem:[%s2525_s0] sm:$0xff] }
  0x22   :  { %v1893_v0 = vrot.slane %v1884_v61, %v1857_v51  ;;  %v1907_v7 = vrot.slane %v1884_v61, %v314_v52 }
  0x9b   :  { %v79_v20 = vpop.permute.xlu0 %78 }
  0x9c   :  { %v254_v22 = vpop.permute.xlu1 %253 }
  0xa0   :  { %v244_v26 = vpop.permute.xlu0 %243 }
  0xf2   :  { %v164_v21 = vpop.f32.mrb[0].mxu0 }
  0xf3   :  { %v165_v23 = vadd.f32 %v164_v21, %v79_v20  ;;  %v235_v24 = vpop.f32.mrb[0].mxu1  ;;  %v166_v25 = vpop.f32.mrb[1].mxu0 }
  0xf4   :  { %v236_v27 = vadd.f32 %v235_v24, %v79_v20  ;;  %v167_v28 = vadd.f32 %v166_v25, %v79_v20  ;;  %v237_v29 = vpop.f32.mrb[1].mxu1 }
  0xf5   :  { %v246_v30 = vmul.f32 %v244_v26, %v165_v23  ;;  %v238_v31 = vadd.f32 %v237_v29, %v79_v20 }
  0xf6   :  { %v248_v32 = vmul.f32 %v244_v26, %v236_v27  ;;  %v247_v33 = vmul.f32 %v244_v26, %v167_v28 }
  0xf7   :  { %v249_v34 = vmul.f32 %v244_v26, %v238_v31  ;;  %v256_v35 = vadd.f32 %v254_v22, %v246_v30  ;;  %v347_v30 = vsub.s32 2, %v1854_v49  ;;  %v380_v31 = vsub.s32 3, %v1854_v49 }
  0xf8   :  { %v257_v36 = vadd.f32 %v254_v22, %v247_v33  ;;  %v258_v37 = vadd.f32 %v254_v22, %v248_v32 }
  0xf9   :  { %v1769_v38 = vmax.f32 %v256_v35, 0.0  ;;  %v259_v39 = vadd.f32 %v254_v22, %v249_v34  ;;  %v1938_v34 = vrot.slane %v1864_v55, %v347_v30  ;;  %v1942_v35 = vrot.slane %v1864_v55, %v380_v31 }
  0xfa   :  { %v1771_v40 = vmax.f32 %v257_v36, 0.0  ;;  %v1777_v41 = vmax.f32 %v258_v37, 0.0 }
  0xfb   :  { %264 = vrot.lane.b32.xlu1 %v1769_v38, %s1651_s2  ;;  %v1779_v42 = vmax.f32 %v259_v39, 0.0 }
  0xfc   :  { %266 = vrot.lane.b32.xlu0 %v1771_v40, %s1651_s2 }
  0xff   :  { %268 = vrot.lane.b32.xlu1 %v1777_v41, %s1651_s2 }
 0x100   :  { %270 = vrot.lane.b32.xlu0 %v1779_v42, %s1651_s2 }
 0x103   :  { %299 = vrot.lane.b32.xlu1 %v1769_v38, %s1647_s15 }
 0x104   :  { %301 = vrot.lane.b32.xlu0 %v1771_v40, %s1647_s15 }
 0x107   :  { %303 = vrot.lane.b32.xlu1 %v1777_v41, %s1647_s15 }
 0x108   :  { %305 = vrot.lane.b32.xlu0 %v1779_v42, %s1647_s15 }
 0x10b   :  { %332 = vrot.lane.b32.xlu1 %v1769_v38, %s1652_s4 }
 0x10c   :  { %334 = vrot.lane.b32.xlu0 %v1771_v40, %s1652_s4 }
 0x10f   :  { %336 = vrot.lane.b32.xlu1 %v1777_v41, %s1652_s4 }
 0x110   :  { %338 = vrot.lane.b32.xlu0 %v1779_v42, %s1652_s4 }
 0x113   :  { %365 = vrot.lane.b32.xlu1 %v1769_v38, %s1653_s5 }
 0x114   :  { %367 = vrot.lane.b32.xlu0 %v1771_v40, %s1653_s5 }
 0x117   :  { %369 = vrot.lane.b32.xlu1 %v1777_v41, %s1653_s5 }
 0x118   :  { %371 = vrot.lane.b32.xlu0 %v1779_v42, %s1653_s5 }
 0x11b   :  { %418 = vrot.lane.b32.xlu1 %v1769_v38, %s1654_s24 }
 0x11c   :  { %420 = vrot.lane.b32.xlu0 %v1771_v40, %s1654_s24 }
 0x11f   :  { %422 = vrot.lane.b32.xlu1 %v1777_v41, %s1654_s24 }
 0x120   :  { %424 = vrot.lane.b32.xlu0 %v1779_v42, %s1654_s24 }
 0x123   :  { %451 = vrot.lane.b32.xlu1 %v1769_v38, %s1655_s25 }
 0x124   :  { %453 = vrot.lane.b32.xlu0 %v1771_v40, %s1655_s25 }
 0x127   :  { %455 = vrot.lane.b32.xlu1 %v1777_v41, %s1655_s25 }
 0x128   :  { %457 = vrot.lane.b32.xlu0 %v1779_v42, %s1655_s25 }
 0x12b   :  { %484 = vrot.lane.b32.xlu1 %v1769_v38, %s1656_s26 }
 0x12c   :  { %486 = vrot.lane.b32.xlu0 %v1771_v40, %s1656_s26 }
 0x12f   :  { %488 = vrot.lane.b32.xlu1 %v1777_v41, %s1656_s26 }
 0x130   :  { %490 = vrot.lane.b32.xlu0 %v1779_v42, %s1656_s26 }
 0x133   :  { %517 = vrot.lane.b32.xlu1 %v1769_v38, %s1657_s27 }
 0x134   :  { %519 = vrot.lane.b32.xlu0 %v1771_v40, %s1657_s27 }
 0x137   :  { %521 = vrot.lane.b32.xlu1 %v1777_v41, %s1657_s27 }
 0x138   :  { %523 = vrot.lane.b32.xlu0 %v1779_v42, %s1657_s27 }
 0x13b   :  { %554 = vperm.xlu1 %1596, %v551_v43   ;;  %v1947_v43 = vrot.slane %v1884_v61, %v347_v30 }
 0x13c   :  { %706 = vperm.xlu0 %1595, %v703_v44   ;;  %v1950_v44 = vrot.slane %v1889_v62, %v347_v30 }
 0x13f   :  { %716 = vperm.xlu1 %1596, %v713_v45  }
 0x16d   :  { %v265_v47 = vpop.permute.xlu1 %264 }
 0x16e   :  { %v267_v50 = vpop.permute.xlu0 %266 }
 0x16f   :  { %v277_v58 = vsel %vm274_vm4, %v265_v47, %v267_v50 }
 0x170   :  { %v296_v5 = vmul.f32 %v1868_v56, %v277_v58  ;;  %v1966_v58 = vrot.slane %v1879_v60, %v347_v30 }
 0x171   :  { %v269_v53 = vpop.permute.xlu1 %268 }
 0x172   :  { %v271_v54 = vpop.permute.xlu0 %270  ;;  %v276_v13 = vsel %vm274_vm4, %v267_v50, %v269_v53 }
 0x173   :  { %v275_v10 = vsel %vm274_vm4, %v269_v53, %v271_v54  ;;  %v278_v11 = vsel %vm274_vm4, %v271_v54, %v265_v47  ;;  %v297_v24 = vmul.f32 %v1914_v9, %v276_v13  ;;  %v1955_v47 = vrot.slane %v1879_v60, %v380_v31 }
 0x174   :  { %v295_v20 = vmul.f32 %v1893_v0, %v278_v11  ;;  %v298_v21 = vmul.f32 %v1897_v2, %v275_v10  ;;  %v1960_v53 = vrot.slane %v1884_v61, %v380_v31  ;;  %v1963_v54 = vrot.slane %v1889_v62, %v380_v31 }
 0x175   :  { %v300_v59 = vpop.permute.xlu1 %299  ;;  %v433_v13 = vsub.s32 5, %v1854_v49 }
 0x176   :  { %v302_v63 = vpop.permute.xlu0 %301 }
 0x177   :  { %v310_v3 = vsel %vm307_vm5, %v300_v59, %v302_v63  ;;  %v2001_v31 = vrot.slane %v1864_v55, %v433_v13 }
 0x178   :  { %v329_v6 = vmul.f32 %v1872_v57, %v310_v3 }
 0x179   :  { %v304_v12 = vpop.permute.xlu1 %303 }
 0x17a   :  { %v309_v14 = vsel %vm307_vm5, %v302_v63, %v304_v12  ;;  %v306_v15 = vpop.permute.xlu0 %305  ;;  %v1484_v16 = vpack.c.bf16 %v329_v6, %v296_v5  ;;  %v400_v5 = vsub.s32 4, %v1854_v49 }
 0x17b   :  { %v330_v17 = vmul.f32 %v1902_v4, %v309_v14  ;;  %v308_v18 = vsel %vm307_vm5, %v304_v12, %v306_v15  ;;  %v311_v19 = vsel %vm307_vm5, %v306_v15, %v300_v59 }
 0x17c   :  { %v328_v22 = vmul.f32 %v1907_v7, %v311_v19  ;;  %v331_v23 = vmul.f32 %v1910_v8, %v308_v18  ;;  %1485 = vmatprep.subr.bf16.mxu0 %v1484_v16 }
 0x17d   :  { %v333_v25 = vpop.permute.xlu1 %332  ;;  %v1502_v29 = vpack.c.bf16 %v330_v17, %v297_v24 }
 0x17e   :  { %v1486_v26 = vpack.c.bf16 %v328_v22, %v295_v20  ;;  %v335_v27 = vpop.permute.xlu0 %334  ;;  %v1500_v28 = vpack.c.bf16 %v331_v23, %v298_v21  ;;  %v1990_v23 = vrot.slane %v1884_v61, %v400_v5 }
 0x17f   :  { %v343_v36 = vsel %vm340_vm6, %v333_v25, %v335_v27 }
 0x180   :  { %1487 = vmatpush1.bf16.msra.mxu0 %v1486_v26  ;;  %1501 = vmatprep.subr.bf16.mxu1 %v1500_v28  ;;  %v362_v50 = vmul.f32 %v1938_v34, %v343_v36  ;;  %v1996_v28 = vrot.slane %v1879_v60, %v400_v5  ;;  %v2010_v36 = vrot.slane %v1889_v62, %v433_v13 }
 0x181   :  { %1503 = vmatpush1.bf16.msra.mxu1 %v1502_v29  ;;  %v337_v32 = vpop.permute.xlu1 %336 }
 0x182   :  { %v339_v33 = vpop.permute.xlu0 %338  ;;  %v342_v6 = vsel %vm340_vm6, %v335_v27, %v337_v32 }
 0x183   :  { %v341_v59 = vsel %vm340_vm6, %v337_v32, %v339_v33  ;;  %v344_v63 = vsel %vm340_vm6, %v339_v33, %v333_v25  ;;  %v363_v21 = vmul.f32 %v1966_v58, %v342_v6  ;;  %v1993_v25 = vrot.slane %v1884_v61, %v433_v13 }
 0x184   :  { %v361_v17 = vmul.f32 %v1947_v43, %v344_v63  ;;  %v364_v18 = vmul.f32 %v1950_v44, %v341_v59  ;;  %v2004_v32 = vrot.slane %v1864_v55, %v400_v5  ;;  %v2007_v33 = vrot.slane %v1879_v60, %v433_v13 }
 0x185   :  { %v366_v37 = vpop.permute.xlu1 %365 }
 0x186   :  { %v368_v39 = vpop.permute.xlu0 %367  ;;  %v415_v6 = vmul.f32 %v2004_v32, %v1771_v40 }
 0x187   :  { %v376_v45 = vsel %vm373_vm7, %v366_v37, %v368_v39 }
 0x188   :  { %v395_v52 = vmul.f32 %v1942_v35, %v376_v45  ;;  %v414_v45 = vmul.f32 %v1990_v23, %v1769_v38  ;;  %v416_v38 = vmul.f32 %v1996_v28, %v1777_v41  ;;  %v466_v41 = vsub.s32 6, %v1854_v49 }
 0x189   :  { %v370_v3 = vpop.permute.xlu1 %369 }
 0x18a   :  { %v375_v10 = vsel %vm373_vm7, %v368_v39, %v370_v3  ;;  %v372_v11 = vpop.permute.xlu0 %371  ;;  %v1488_v12 = vpack.c.bf16 %v395_v52, %v362_v50 }
 0x18b   :  { %v396_v14 = vmul.f32 %v1955_v47, %v375_v10  ;;  %v374_v15 = vsel %vm373_vm7, %v370_v3, %v372_v11  ;;  %v377_v16 = vsel %vm373_vm7, %v372_v11, %v366_v37  ;;  %v2013_v37 = vrot.slane %v1889_v62, %v400_v5 }
 0x18c   :  { %v394_v19 = vmul.f32 %v1960_v53, %v377_v16  ;;  %v397_v20 = vmul.f32 %v1963_v54, %v374_v15  ;;  %1489 = vmatprep.subr.bf16.mxu0 %v1488_v12 }
 0x18d   :  { %v419_v22 = vpop.permute.xlu1 %418  ;;  %v1506_v29 = vpack.c.bf16 %v396_v14, %v363_v21  ;;  %v417_v12 = vmul.f32 %v2013_v37, %v1779_v42  ;;  %v2038_v21 = vrot.slane %v1884_v61, %v466_v41 }
 0x18e   :  { %v1490_v24 = vpack.c.bf16 %v394_v19, %v361_v17  ;;  %v421_v26 = vpop.permute.xlu0 %420  ;;  %v1504_v27 = vpack.c.bf16 %v397_v20, %v364_v18  ;;  %v499_v20 = vsub.s32 7, %v1854_v49 }
 0x18f   :  { %v429_v30 = vsel %vm426_vm8, %v419_v22, %v421_v26 }
 0x190   :  { %1491 = vmatpush1.bf16.msra.mxu0 %v1490_v24  ;;  %1505 = vmatprep.subr.bf16.mxu1 %v1504_v27  ;;  %v447_v50 = vmul.f32 %v1993_v25, %v429_v30  ;;  %v2044_v24 = vrot.slane %v1884_v61, %v499_v20  ;;  %v2062_v61 = vrot.slane %v1879_v60, %v499_v20 }
 0x191   :  { %1507 = vmatpush1.bf16.msra.mxu1 %v1506_v29  ;;  %v423_v39 = vpop.permute.xlu1 %422  ;;  %v2049_v29 = vrot.slane %v1879_v60, %v466_v41 }
 0x192   :  { %v428_v52 = vsel %vm426_vm8, %v421_v26, %v423_v39  ;;  %v425_v59 = vpop.permute.xlu0 %424  ;;  %v1494_v15 = vpack.c.bf16 %v447_v50, %v414_v45  ;;  %v2059_v50 = vrot.slane %v1889_v62, %v466_v41 }
 0x193   :  { %v448_v63 = vmul.f32 %v2001_v31, %v428_v52  ;;  %v427_v3 = vsel %vm426_vm8, %v423_v39, %v425_v59  ;;  %v430_v5 = vsel %vm426_vm8, %v425_v59, %v419_v22  ;;  %v2041_v22 = vrot.slane %v1864_v55, %v466_v41 }
 0x194   :  { %v449_v10 = vmul.f32 %v2007_v33, %v427_v3  ;;  %v450_v11 = vmul.f32 %v2010_v36, %v430_v5  ;;  %v2054_v39 = vrot.slane %v1864_v55, %v499_v20  ;;  %v2065_v52 = vrot.slane %v1889_v62, %v499_v20  ;;  %v2089_v20 = vld [vmem:[%s2525_s0 + $0x28] ss:$0 sm:$0xff] }
 0x195   :  { %v452_v13 = vpop.permute.xlu1 %451  ;;  %v1492_v14 = vpack.c.bf16 %v448_v63, %v415_v6 }
 0x196   :  { %v1510_v16 = vpack.c.bf16 %v449_v10, %v416_v38  ;;  %v454_v17 = vpop.permute.xlu0 %453  ;;  %v1508_v18 = vpack.c.bf16 %v450_v11, %v417_v12 }
 0x197   :  { %1493 = vmatprep.subr.bf16.mxu0 %v1492_v14  ;;  %v462_v27 = vsel %vm459_vm9, %v452_v13, %v454_v17 }
 0x198   :  { %1495 = vmatpush1.bf16.msra.mxu0 %v1494_v15  ;;  %1509 = vmatprep.subr.bf16.mxu1 %v1508_v18  ;;  %v480_v3 = vmul.f32 %v2038_v21, %v462_v27 }
 0x199   :  { %1511 = vmatpush1.bf16.msra.mxu1 %v1510_v16  ;;  %v456_v40 = vpop.permute.xlu1 %455 }
 0x19a   :  { %v458_v19 = vpop.permute.xlu0 %457  ;;  %v461_v45 = vsel %vm459_vm9, %v454_v17, %v456_v40 }
 0x19b   :  { %v460_v59 = vsel %vm459_vm9, %v456_v40, %v458_v19  ;;  %v463_v63 = vsel %vm459_vm9, %v458_v19, %v452_v13  ;;  %v481_v60 = vmul.f32 %v2041_v22, %v461_v45  ;;  %v2106_v45 = vld [vmem:[%s2525_s0 + $0x38] ss:$0 sm:$0xff] }
 0x19c   :  { %v482_v12 = vmul.f32 %v2049_v29, %v460_v59  ;;  %v483_v13 = vmul.f32 %v2059_v50, %v463_v63 }
 0x19d   :  { %v485_v42 = vpop.permute.xlu1 %484 }
 0x19e   :  { %v487_v26 = vpop.permute.xlu0 %486 }
 0x19f   :  { %v495_v30 = vsel %vm492_vm10, %v485_v42, %v487_v26 }
 0x1a0   :  { %v513_v5 = vmul.f32 %v2044_v24, %v495_v30  ;;  %v2101_v30 = vld [vmem:[%s2525_s0 + $0x30] ss:$0 sm:$0xff] }
 0x1a1   :  { %v489_v55 = vpop.permute.xlu1 %488 }
 0x1a2   :  { %v494_v6 = vsel %vm492_vm10, %v487_v26, %v489_v55  ;;  %v491_v38 = vpop.permute.xlu0 %490  ;;  %v1498_v18 = vpack.c.bf16 %v513_v5, %v480_v3 }
 0x1a3   :  { %v514_v62 = vmul.f32 %v2054_v39, %v494_v6  ;;  %v493_v10 = vsel %vm492_vm10, %v489_v55, %v491_v38  ;;  %v496_v11 = vsel %vm492_vm10, %v491_v38, %v485_v42  ;;  %v2094_v42 = vld [vmem:[%s2525_s0 + $0x20] ss:$0 sm:$0xff] }
 0x1a4   :  { %v515_v14 = vmul.f32 %v2062_v61, %v493_v10  ;;  %v516_v15 = vmul.f32 %v2065_v52, %v496_v11 }
 0x1a5   :  { %v518_v16 = vpop.permute.xlu1 %517  ;;  %v1496_v17 = vpack.c.bf16 %v514_v62, %v481_v60  ;;  %v550_v62 = vld [vmem:[%s2531_s6] sm:$0xff] }
 0x1a6   :  { %v1514_v40 = vpack.c.bf16 %v515_v14, %v482_v12  ;;  %v520_v41 = vpop.permute.xlu0 %519  ;;  %v1512_v19 = vpack.c.bf16 %v516_v15, %v483_v13 }
 0x1a7   :  { %1497 = vmatprep.subr.bf16.mxu0 %v1496_v17  ;;  %v528_v26 = vsel %vm525_vm11, %v518_v16, %v520_v41 }
 0x1a8   :  { %1499 = vmatpush1.bf16.msra.mxu0 %v1498_v18  ;;  %1513 = vmatprep.subr.bf16.mxu1 %v1512_v19  ;;  %v546_v6 = vmul.f32 %v2094_v42, %v528_v26 }
 0x1a9   :  { %1515 = vmatpush1.bf16.msra.mxu1 %v1514_v40  ;;  %v522_v27 = vpop.permute.xlu1 %521 }
 0x1aa   :  { %v527_v59 = vsel %vm525_vm11, %v520_v41, %v522_v27  ;;  %v524_v63 = vpop.permute.xlu0 %523 }
 0x1ab   :  { %v547_v55 = vmul.f32 %v2089_v20, %v527_v59  ;;  %v526_v3 = vsel %vm525_vm11, %v522_v27, %v524_v63  ;;  %v529_v5 = vsel %vm525_vm11, %v524_v63, %v518_v16 }
 0x1ac   :  { %v548_v38 = vmul.f32 %v2101_v30, %v526_v3  ;;  %v549_v60 = vmul.f32 %v2106_v45, %v529_v5 }
 0x1ad   :  { %577 = vmatprep.subr.mxu0 %v547_v55 }
 0x1ae   :  { %578 = vmatpush1.msra.mxu0 %v546_v6  ;;  %648 = vmatprep.subr.mxu1 %v549_v60 }
 0x1af   :  { %1458 = vmatmul.mubr.msk.f32.vlgmr.msra.gmra.mrb[2].mxu0 %vm557_vm12, %v550_v62  ;;  %649 = vmatpush1.msra.mxu1 %v548_v38 }
 0x1b0   :  { %1459 = vmatmul.mubr.msk.f32.vlgmr.msra.gmra.mrb[2].mxu1 %vm557_vm12, %v550_v62  ;;  %935 = vmatprep.mubr.f32.mxu0 %v1648_v1 }
 0x1b1   :  { %1006 = vmatprep.mubr.f32.mxu1 %v1648_v1 }
 0x1ba   :  { %v555_v10 = vpop.permute.xlu1 %554 }
 0x1bb   :  { %v707_v15 = vpop.permute.xlu0 %706 }
 0x1be   :  { %v717_v19 = vpop.permute.xlu1 %716 }
 0x282   :  { %v627_v11 = vpop.f32.mrb[2].mxu0 }
 0x283   :  { %v628_v12 = vadd.f32 %v627_v11, %v555_v10  ;;  %v629_v13 = vpop.f32.mrb[3].mxu0  ;;  %v698_v14 = vpop.f32.mrb[2].mxu1  ;;  %v1464_v11 = vld [vmem:[%s2533_s8 + $0x8] sm:$0xff] }
 0x284   :  { %v630_v16 = vadd.f32 %v629_v13, %v555_v10  ;;  %v699_v17 = vadd.f32 %v698_v14, %v555_v10  ;;  %v700_v18 = vpop.f32.mrb[3].mxu1 }
 0x285   :  { %v709_v40 = vmul.f32 %v707_v15, %v628_v12  ;;  %v701_v41 = vadd.f32 %v700_v18, %v555_v10  ;;  %v1461_v10 = vld [vmem:[%s2532_s7 + $0x8] sm:$0xff] }
 0x286   :  { %v710_v26 = vmul.f32 %v707_v15, %v630_v16  ;;  %v711_v27 = vmul.f32 %v707_v15, %v699_v17  ;;  %v1465_v12 = vld [vmem:[%s2534_s9 + $0x8] sm:$0xff] }
 0x287   :  { %v719_v59 = vadd.f32 %v717_v19, %v709_v40  ;;  %v712_v63 = vmul.f32 %v707_v15, %v701_v41 }
 0x288   :  { %v720_v55 = vadd.f32 %v717_v19, %v710_v26  ;;  %v721_v5 = vadd.f32 %v717_v19, %v711_v27 }
 0x289   :  { %v2125_v3 = vmax.f32 %v719_v59, 0.0  ;;  %v722_v38 = vadd.f32 %v717_v19, %v712_v63 }
 0x28a   :  { %v2127_v6 = vmax.f32 %v720_v55, 0.0  ;;  %v2133_v60 = vmax.f32 %v721_v5, 0.0 }
 0x28b   :  { %727 = vrot.lane.b32.xlu0 %v2125_v3, %s1651_s2  ;;  %v2135_v62 = vmax.f32 %v722_v38, 0.0 }
 0x28c   :  { %729 = vrot.lane.b32.xlu1 %v2127_v6, %s1651_s2 }
 0x28f   :  { %731 = vrot.lane.b32.xlu0 %v2133_v60, %s1651_s2 }
 0x290   :  { %733 = vrot.lane.b32.xlu1 %v2135_v62, %s1651_s2 }
 0x293   :  { %743 = vrot.lane.b32.xlu0 %v2125_v3, %s1647_s15 }
 0x294   :  { %745 = vrot.lane.b32.xlu1 %v2127_v6, %s1647_s15 }
 0x297   :  { %747 = vrot.lane.b32.xlu0 %v2133_v60, %s1647_s15 }
 0x298   :  { %749 = vrot.lane.b32.xlu1 %v2135_v62, %s1647_s15 }
 0x29b   :  { %759 = vrot.lane.b32.xlu0 %v2125_v3, %s1652_s4 }
 0x29c   :  { %761 = vrot.lane.b32.xlu1 %v2127_v6, %s1652_s4 }
 0x29f   :  { %763 = vrot.lane.b32.xlu0 %v2133_v60, %s1652_s4 }
 0x2a0   :  { %765 = vrot.lane.b32.xlu1 %v2135_v62, %s1652_s4 }
 0x2a3   :  { %775 = vrot.lane.b32.xlu0 %v2125_v3, %s1653_s5 }
 0x2a4   :  { %777 = vrot.lane.b32.xlu1 %v2127_v6, %s1653_s5 }
 0x2a7   :  { %779 = vrot.lane.b32.xlu0 %v2133_v60, %s1653_s5 }
 0x2a8   :  { %781 = vrot.lane.b32.xlu1 %v2135_v62, %s1653_s5 }
 0x2ab   :  { %795 = vrot.lane.b32.xlu0 %v2125_v3, %s1654_s24 }
 0x2ac   :  { %797 = vrot.lane.b32.xlu1 %v2127_v6, %s1654_s24 }
 0x2af   :  { %799 = vrot.lane.b32.xlu0 %v2133_v60, %s1654_s24 }
 0x2b0   :  { %801 = vrot.lane.b32.xlu1 %v2135_v62, %s1654_s24 }
 0x2b3   :  { %811 = vrot.lane.b32.xlu0 %v2125_v3, %s1655_s25 }
 0x2b4   :  { %813 = vrot.lane.b32.xlu1 %v2127_v6, %s1655_s25 }
 0x2b7   :  { %815 = vrot.lane.b32.xlu0 %v2133_v60, %s1655_s25 }
 0x2b8   :  { %817 = vrot.lane.b32.xlu1 %v2135_v62, %s1655_s25 }
 0x2bb   :  { %827 = vrot.lane.b32.xlu0 %v2125_v3, %s1656_s26 }
 0x2bc   :  { %829 = vrot.lane.b32.xlu1 %v2127_v6, %s1656_s26 }
 0x2bf   :  { %831 = vrot.lane.b32.xlu0 %v2133_v60, %s1656_s26 }
 0x2c0   :  { %833 = vrot.lane.b32.xlu1 %v2135_v62, %s1656_s26 }
 0x2c3   :  { %843 = vrot.lane.b32.xlu0 %v2125_v3, %s1657_s27 }
 0x2c4   :  { %845 = vrot.lane.b32.xlu1 %v2127_v6, %s1657_s27 }
 0x2c7   :  { %847 = vrot.lane.b32.xlu0 %v2133_v60, %s1657_s27 }
 0x2c8   :  { %849 = vrot.lane.b32.xlu1 %v2135_v62, %s1657_s27 }
 0x2cb   :  { %865 = vperm.xlu0 %1595, %v1461_v10  }
 0x2cc   :  { %1017 = vperm.xlu1 %1596, %v1464_v11  }
 0x2cf   :  { %1028 = vperm.xlu0 %1595, %v1465_v12  }
 0x2fd   :  { %v728_v13 = vpop.permute.xlu0 %727 }
 0x2fe   :  { %v730_v14 = vpop.permute.xlu1 %729 }
 0x2ff   :  { %v737_v17 = vsel %vm274_vm4, %v728_v13, %v730_v14 }
 0x300   :  { %v740_v19 = vmul.f32 %v737_v17, %v1868_v56 }
 0x301   :  { %v732_v15 = vpop.permute.xlu0 %731 }
 0x302   :  { %v734_v16 = vpop.permute.xlu1 %733  ;;  %v736_v55 = vsel %vm274_vm4, %v730_v14, %v732_v15 }
 0x303   :  { %v735_v27 = vsel %vm274_vm4, %v732_v15, %v734_v16  ;;  %v738_v59 = vsel %vm274_vm4, %v734_v16, %v728_v13  ;;  %v741_v15 = vmul.f32 %v736_v55, %v1914_v9 }
 0x304   :  { %v742_v13 = vmul.f32 %v735_v27, %v1897_v2 }
 0x305   :  { %v744_v18 = vpop.permute.xlu0 %743 }
 0x306   :  { %v746_v40 = vpop.permute.xlu1 %745 }
 0x307   :  { %v753_v41 = vsel %vm307_vm5, %v744_v18, %v746_v40 }
 0x308   :  { %v756_v26 = vmul.f32 %v753_v41, %v1872_v57  ;;  %v739_v41 = vmul.f32 %v738_v59, %v1893_v0 }
 0x309   :  { %v748_v63 = vpop.permute.xlu0 %747 }
 0x30a   :  { %v752_v5 = vsel %vm307_vm5, %v746_v40, %v748_v63  ;;  %v750_v38 = vpop.permute.xlu1 %749  ;;  %v1516_v10 = vpack.c.bf16 %v756_v26, %v740_v19 }
 0x30b   :  { %v757_v11 = vmul.f32 %v752_v5, %v1902_v4  ;;  %v751_v12 = vsel %vm307_vm5, %v748_v63, %v750_v38  ;;  %v754_v17 = vsel %vm307_vm5, %v750_v38, %v744_v18 }
 0x30c   :  { %v755_v16 = vmul.f32 %v754_v17, %v1907_v7  ;;  %v758_v14 = vmul.f32 %v751_v12, %v1910_v8  ;;  %1517 = vmatprep.subr.bf16.mxu0 %v1516_v10 }
 0x30d   :  { %v760_v40 = vpop.permute.xlu0 %759  ;;  %v1534_v46 = vpack.c.bf16 %v757_v11, %v741_v15 }
 0x30e   :  { %v1518_v19 = vpack.c.bf16 %v755_v16, %v739_v41  ;;  %v762_v26 = vpop.permute.xlu1 %761  ;;  %v1532_v5 = vpack.c.bf16 %v758_v14, %v742_v13 }
 0x30f   :  { %v769_v27 = vsel %vm340_vm6, %v760_v40, %v762_v26 }
 0x310   :  { %1519 = vmatpush1.bf16.msra.mxu0 %v1518_v19  ;;  %1533 = vmatprep.subr.bf16.mxu1 %v1532_v5  ;;  %v772_v55 = vmul.f32 %v769_v27, %v1938_v34 }
 0x311   :  { %1535 = vmatpush1.bf16.msra.mxu1 %v1534_v46  ;;  %v764_v18 = vpop.permute.xlu0 %763 }
 0x312   :  { %v766_v63 = vpop.permute.xlu1 %765  ;;  %v768_v41 = vsel %vm340_vm6, %v762_v26, %v764_v18 }
 0x313   :  { %v767_v11 = vsel %vm340_vm6, %v764_v18, %v766_v63  ;;  %v770_v46 = vsel %vm340_vm6, %v766_v63, %v760_v40  ;;  %v773_v18 = vmul.f32 %v768_v41, %v1966_v58 }
 0x314   :  { %v771_v27 = vmul.f32 %v770_v46, %v1947_v43  ;;  %v774_v40 = vmul.f32 %v767_v11, %v1950_v44  ;;  %v791_v11 = vmul.f32 %v2125_v3, %v1990_v23  ;;  %v793_v3 = vmul.f32 %v2133_v60, %v1996_v28 }
 0x315   :  { %v776_v59 = vpop.permute.xlu0 %775 }
 0x316   :  { %v778_v38 = vpop.permute.xlu1 %777 }
 0x317   :  { %v785_v10 = vsel %vm373_vm7, %v776_v59, %v778_v38 }
 0x318   :  { %v788_v12 = vmul.f32 %v785_v10, %v1942_v35 }
 0x319   :  { %v780_v17 = vpop.permute.xlu0 %779 }
 0x31a   :  { %v784_v13 = vsel %vm373_vm7, %v778_v38, %v780_v17  ;;  %v782_v16 = vpop.permute.xlu1 %781  ;;  %v1520_v14 = vpack.c.bf16 %v788_v12, %v772_v55 }
 0x31b   :  { %v789_v15 = vmul.f32 %v784_v13, %v1955_v47  ;;  %v783_v19 = vsel %vm373_vm7, %v780_v17, %v782_v16  ;;  %v786_v5 = vsel %vm373_vm7, %v782_v16, %v776_v59 }
 0x31c   :  { %v787_v63 = vmul.f32 %v786_v5, %v1960_v53  ;;  %v790_v26 = vmul.f32 %v783_v19, %v1963_v54  ;;  %1521 = vmatprep.subr.bf16.mxu0 %v1520_v14  ;;  %v792_v5 = vmul.f32 %v2127_v6, %v2004_v32 }
 0x31d   :  { %v796_v38 = vpop.permute.xlu0 %795  ;;  %v1538_v13 = vpack.c.bf16 %v789_v15, %v773_v18 }
 0x31e   :  { %v1522_v10 = vpack.c.bf16 %v787_v63, %v771_v27  ;;  %v798_v55 = vpop.permute.xlu1 %797  ;;  %v1536_v12 = vpack.c.bf16 %v790_v26, %v774_v40  ;;  %v794_v63 = vmul.f32 %v2135_v62, %v2013_v37 }
 0x31f   :  { %v805_v17 = vsel %vm426_vm8, %v796_v38, %v798_v55 }
 0x320   :  { %1523 = vmatpush1.bf16.msra.mxu0 %v1522_v10  ;;  %1537 = vmatprep.subr.bf16.mxu1 %v1536_v12  ;;  %v807_v46 = vmul.f32 %v805_v17, %v1993_v25 }
 0x321   :  { %1539 = vmatpush1.bf16.msra.mxu1 %v1538_v13  ;;  %v800_v59 = vpop.permute.xlu0 %799 }
 0x322   :  { %v804_v41 = vsel %vm426_vm8, %v798_v55, %v800_v59  ;;  %v802_v16 = vpop.permute.xlu1 %801  ;;  %v1526_v10 = vpack.c.bf16 %v807_v46, %v791_v11 }
 0x323   :  { %v808_v14 = vmul.f32 %v804_v41, %v2001_v31  ;;  %v803_v15 = vsel %vm426_vm8, %v800_v59, %v802_v16  ;;  %v806_v19 = vsel %vm426_vm8, %v802_v16, %v796_v38 }
 0x324   :  { %v809_v27 = vmul.f32 %v803_v15, %v2007_v33  ;;  %v810_v40 = vmul.f32 %v806_v19, %v2010_v36 }
 0x325   :  { %v812_v26 = vpop.permute.xlu0 %811  ;;  %v1524_v18 = vpack.c.bf16 %v808_v14, %v792_v5 }
 0x326   :  { %v1542_v55 = vpack.c.bf16 %v809_v27, %v793_v3  ;;  %v814_v12 = vpop.permute.xlu1 %813  ;;  %v1540_v13 = vpack.c.bf16 %v810_v40, %v794_v63 }
 0x327   :  { %1525 = vmatprep.subr.bf16.mxu0 %v1524_v18  ;;  %v821_v59 = vsel %vm459_vm9, %v812_v26, %v814_v12 }
 0x328   :  { %1527 = vmatpush1.bf16.msra.mxu0 %v1526_v10  ;;  %1541 = vmatprep.subr.bf16.mxu1 %v1540_v13  ;;  %v823_v14 = vmul.f32 %v821_v59, %v2038_v21 }
 0x329   :  { %1543 = vmatpush1.bf16.msra.mxu1 %v1542_v55  ;;  %v816_v6 = vpop.permute.xlu0 %815 }
 0x32a   :  { %v818_v38 = vpop.permute.xlu1 %817  ;;  %v820_v11 = vsel %vm459_vm9, %v814_v12, %v816_v6 }
 0x32b   :  { %v819_v46 = vsel %vm459_vm9, %v816_v6, %v818_v38  ;;  %v822_v41 = vsel %vm459_vm9, %v818_v38, %v812_v26  ;;  %v824_v3 = vmul.f32 %v820_v11, %v2041_v22 }
 0x32c   :  { %v825_v26 = vmul.f32 %v819_v46, %v2049_v29  ;;  %v826_v18 = vmul.f32 %v822_v41, %v2059_v50 }
 0x32d   :  { %v828_v60 = vpop.permute.xlu0 %827 }
 0x32e   :  { %v830_v17 = vpop.permute.xlu1 %829 }
 0x32f   :  { %v837_v62 = vsel %vm492_vm10, %v828_v60, %v830_v17 }
 0x330   :  { %v839_v15 = vmul.f32 %v837_v62, %v2044_v24 }
 0x331   :  { %v832_v16 = vpop.permute.xlu0 %831 }
 0x332   :  { %v836_v19 = vsel %vm492_vm10, %v830_v17, %v832_v16  ;;  %v834_v5 = vpop.permute.xlu1 %833  ;;  %v1530_v6 = vpack.c.bf16 %v839_v15, %v823_v14 }
 0x333   :  { %v840_v27 = vmul.f32 %v836_v19, %v2054_v39  ;;  %v835_v40 = vsel %vm492_vm10, %v832_v16, %v834_v5  ;;  %v838_v63 = vsel %vm492_vm10, %v834_v5, %v828_v60 }
 0x334   :  { %v841_v10 = vmul.f32 %v835_v40, %v2062_v61  ;;  %v842_v55 = vmul.f32 %v838_v63, %v2065_v52 }
 0x335   :  { %v844_v12 = vpop.permute.xlu0 %843  ;;  %v1528_v13 = vpack.c.bf16 %v840_v27, %v824_v3  ;;  %v1460_v3 = vld [vmem:[%s2531_s6 + $0x8] sm:$0xff] }
 0x336   :  { %v1546_v38 = vpack.c.bf16 %v841_v10, %v825_v26  ;;  %v846_v17 = vpop.permute.xlu1 %845  ;;  %v1544_v59 = vpack.c.bf16 %v842_v55, %v826_v18 }
 0x337   :  { %1529 = vmatprep.subr.bf16.mxu0 %v1528_v13  ;;  %v853_v60 = vsel %vm525_vm11, %v844_v12, %v846_v17 }
 0x338   :  { %1531 = vmatpush1.bf16.msra.mxu0 %v1530_v6  ;;  %1545 = vmatprep.subr.bf16.mxu1 %v1544_v59  ;;  %v855_v15 = vmul.f32 %v2094_v42, %v853_v60 }
 0x339   :  { %1547 = vmatpush1.bf16.msra.mxu1 %v1546_v38  ;;  %v848_v62 = vpop.permute.xlu0 %847 }
 0x33a   :  { %v852_v11 = vsel %vm525_vm11, %v846_v17, %v848_v62  ;;  %v850_v46 = vpop.permute.xlu1 %849 }
 0x33b   :  { %v856_v41 = vmul.f32 %v2089_v20, %v852_v11  ;;  %v851_v16 = vsel %vm525_vm11, %v848_v62, %v850_v46  ;;  %v854_v14 = vsel %vm525_vm11, %v850_v46, %v844_v12 }
 0x33c   :  { %v857_v19 = vmul.f32 %v2101_v30, %v851_v16  ;;  %v858_v5 = vmul.f32 %v2106_v45, %v854_v14 }
 0x33d   :  { %887 = vmatprep.subr.mxu0 %v856_v41 }
 0x33e   :  { %888 = vmatpush1.msra.mxu0 %v855_v15  ;;  %958 = vmatprep.subr.mxu1 %v858_v5  ;;  %v1467_v5 = vld [vmem:[%s2532_s7 + $0x10] sm:$0xff] }
 0x33f   :  { %1462 = vmatmul.mubr.msk.f32.vlgmr.msra.gmra.mrb[4].mxu0 %vm557_vm12, %v1460_v3  ;;  %959 = vmatpush1.msra.mxu1 %v857_v19 }
 0x340   :  { %1463 = vmatmul.mubr.msk.f32.vlgmr.msra.gmra.mrb[4].mxu1 %vm557_vm12, %v1460_v3  ;;  %1247 = vmatprep.mubr.f32.mxu0 %v1648_v1  ;;  %v1470_v3 = vld [vmem:[%s2533_s8 + $0x10] sm:$0xff] }
 0x341   :  { %1318 = vmatprep.mubr.f32.mxu1 %v1648_v1 }
 0x34a   :  { %v866_v27 = vpop.permute.xlu0 %865 }
 0x34b   :  { %v1018_v10 = vpop.permute.xlu1 %1017 }
 0x34e   :  { %v1029_v17 = vpop.permute.xlu0 %1028 }
 0x412   :  { %v937_v40 = vpop.f32.mrb[4].mxu0 }
 0x413   :  { %v938_v63 = vadd.f32 %v937_v40, %v866_v27  ;;  %v939_v26 = vpop.f32.mrb[5].mxu0  ;;  %v1008_v18 = vpop.f32.mrb[4].mxu1  ;;  %v1351_v40 = vld [vmem:[%s2535_s10] sm:$0xff] }
 0x414   :  { %v940_v55 = vadd.f32 %v939_v26, %v866_v27  ;;  %v1009_v12 = vadd.f32 %v1008_v18, %v866_v27  ;;  %v1010_v13 = vpop.f32.mrb[5].mxu1 }
 0x415   :  { %v1020_v6 = vmul.f32 %v1018_v10, %v938_v63  ;;  %v1011_v38 = vadd.f32 %v1010_v13, %v866_v27  ;;  %v1471_v27 = vld [vmem:[%s2534_s9 + $0x10] sm:$0xff]  ;;  %v1385_v63 = vld [vmem:[#allocation2] sm:$0x1] }
 0x416   :  { %v1021_v59 = vmul.f32 %v1018_v10, %v940_v55  ;;  %v1022_v60 = vmul.f32 %v1018_v10, %v1009_v12 }
 0x417   :  { %v1031_v62 = vadd.f32 %v1029_v17, %v1020_v6  ;;  %v1023_v11 = vmul.f32 %v1018_v10, %v1011_v38 }
 0x418   :  { %v1032_v46 = vadd.f32 %v1029_v17, %v1021_v59  ;;  %v1033_v1 = vadd.f32 %v1029_v17, %v1022_v60 }
 0x419   :  { %v2317_v41 = vmax.f32 %v1031_v62, 0.0  ;;  %v1034_v14 = vadd.f32 %v1029_v17, %v1023_v11 }
 0x41a   :  { %v2319_v16 = vmax.f32 %v1032_v46, 0.0  ;;  %v2325_v15 = vmax.f32 %v1033_v1, 0.0 }
 0x41b   :  { %1039 = vrot.lane.b32.xlu1 %v2317_v41, %s1651_s2  ;;  %v2327_v19 = vmax.f32 %v1034_v14, 0.0 }
 0x41c   :  { %1041 = vrot.lane.b32.xlu0 %v2319_v16, %s1651_s2 }
 0x41f   :  { %1043 = vrot.lane.b32.xlu1 %v2325_v15, %s1651_s2 }
 0x420   :  { %1045 = vrot.lane.b32.xlu0 %v2327_v19, %s1651_s2 }
 0x423   :  { %1055 = vrot.lane.b32.xlu1 %v2317_v41, %s1647_s15 }
 0x424   :  { %1057 = vrot.lane.b32.xlu0 %v2319_v16, %s1647_s15 }
 0x427   :  { %1059 = vrot.lane.b32.xlu1 %v2325_v15, %s1647_s15 }
 0x428   :  { %1061 = vrot.lane.b32.xlu0 %v2327_v19, %s1647_s15 }
 0x42b   :  { %1071 = vrot.lane.b32.xlu1 %v2317_v41, %s1652_s4 }
 0x42c   :  { %1073 = vrot.lane.b32.xlu0 %v2319_v16, %s1652_s4 }
 0x42f   :  { %1075 = vrot.lane.b32.xlu1 %v2325_v15, %s1652_s4 }
 0x430   :  { %1077 = vrot.lane.b32.xlu0 %v2327_v19, %s1652_s4 }
 0x433   :  { %1087 = vrot.lane.b32.xlu1 %v2317_v41, %s1653_s5 }
 0x434   :  { %1089 = vrot.lane.b32.xlu0 %v2319_v16, %s1653_s5 }
 0x437   :  { %1091 = vrot.lane.b32.xlu1 %v2325_v15, %s1653_s5 }
 0x438   :  { %1093 = vrot.lane.b32.xlu0 %v2327_v19, %s1653_s5 }
 0x43b   :  { %1107 = vrot.lane.b32.xlu1 %v2317_v41, %s1654_s24 }
 0x43c   :  { %1109 = vrot.lane.b32.xlu0 %v2319_v16, %s1654_s24 }
 0x43f   :  { %1111 = vrot.lane.b32.xlu1 %v2325_v15, %s1654_s24 }
 0x440   :  { %1113 = vrot.lane.b32.xlu0 %v2327_v19, %s1654_s24 }
 0x443   :  { %1123 = vrot.lane.b32.xlu1 %v2317_v41, %s1655_s25 }
 0x444   :  { %1125 = vrot.lane.b32.xlu0 %v2319_v16, %s1655_s25 }
 0x447   :  { %1127 = vrot.lane.b32.xlu1 %v2325_v15, %s1655_s25 }
 0x448   :  { %1129 = vrot.lane.b32.xlu0 %v2327_v19, %s1655_s25 }
 0x44b   :  { %1139 = vrot.lane.b32.xlu1 %v2317_v41, %s1656_s26 }
 0x44c   :  { %1141 = vrot.lane.b32.xlu0 %v2319_v16, %s1656_s26 }
 0x44f   :  { %1143 = vrot.lane.b32.xlu1 %v2325_v15, %s1656_s26 }
 0x450   :  { %1145 = vrot.lane.b32.xlu0 %v2327_v19, %s1656_s26 }
 0x453   :  { %1155 = vrot.lane.b32.xlu1 %v2317_v41, %s1657_s27 }
 0x454   :  { %1157 = vrot.lane.b32.xlu0 %v2319_v16, %s1657_s27 }
 0x457   :  { %1159 = vrot.lane.b32.xlu1 %v2325_v15, %s1657_s27 }
 0x458   :  { %1161 = vrot.lane.b32.xlu0 %v2327_v19, %s1657_s27 }
 0x45b   :  { %1177 = vperm.xlu1 %1596, %v1467_v5  }
 0x45c   :  { %1329 = vperm.xlu0 %1595, %v1470_v3  }
 0x45f   :  { %1340 = vperm.xlu1 %1596, %v1471_v27  }
 0x460   :  { %1354 = vperm.xlu0 %1595, %v1351_v40  }
 0x463   :  { %1388 = vperm.xlu1 %1596, %v1385_v63  }
 0x48d   :  { %v1040_v26 = vpop.permute.xlu1 %1039 }
 0x48e   :  { %v1042_v18 = vpop.permute.xlu0 %1041 }
 0x48f   :  { %v1049_v12 = vsel %vm274_vm4, %v1040_v26, %v1042_v18 }
 0x490   :  { %v1052_v17 = vmul.f32 %v1049_v12, %v1868_v56 }
 0x491   :  { %v1044_v10 = vpop.permute.xlu1 %1043 }
 0x492   :  { %v1046_v55 = vpop.permute.xlu0 %1045  ;;  %v1048_v46 = vsel %vm274_vm4, %v1042_v18, %v1044_v10 }
 0x493   :  { %v1047_v60 = vsel %vm274_vm4, %v1044_v10, %v1046_v55  ;;  %v1050_v62 = vsel %vm274_vm4, %v1046_v55, %v1040_v26  ;;  %v1053_v18 = vmul.f32 %v1048_v46, %v1914_v9 }
 0x494   :  { %v1051_v27 = vmul.f32 %v1050_v62, %v1893_v0  ;;  %v1054_v40 = vmul.f32 %v1047_v60, %v1897_v2 }
 0x495   :  { %v1056_v13 = vpop.permute.xlu1 %1055 }
 0x496   :  { %v1058_v6 = vpop.permute.xlu0 %1057 }
 0x497   :  { %v1065_v38 = vsel %vm307_vm5, %v1056_v13, %v1058_v6 }
 0x498   :  { %v1068_v59 = vmul.f32 %v1065_v38, %v1872_v57 }
 0x499   :  { %v1060_v11 = vpop.permute.xlu1 %1059 }
 0x49a   :  { %v1064_v1 = vsel %vm307_vm5, %v1058_v6, %v1060_v11  ;;  %v1062_v14 = vpop.permute.xlu0 %1061  ;;  %v1548_v5 = vpack.c.bf16 %v1068_v59, %v1052_v17 }
 0x49b   :  { %v1069_v3 = vmul.f32 %v1064_v1, %v1902_v4  ;;  %v1063_v56 = vsel %vm307_vm5, %v1060_v11, %v1062_v14  ;;  %v1066_v57 = vsel %vm307_vm5, %v1062_v14, %v1056_v13 }
 0x49c   :  { %v1067_v63 = vmul.f32 %v1066_v57, %v1907_v7  ;;  %v1070_v26 = vmul.f32 %v1063_v56, %v1910_v8  ;;  %1549 = vmatprep.subr.bf16.mxu0 %v1548_v5 }
 0x49d   :  { %v1072_v10 = vpop.permute.xlu1 %1071  ;;  %v1566_v6 = vpack.c.bf16 %v1069_v3, %v1053_v18 }
 0x49e   :  { %v1550_v55 = vpack.c.bf16 %v1067_v63, %v1051_v27  ;;  %v1074_v4 = vpop.permute.xlu0 %1073  ;;  %v1564_v12 = vpack.c.bf16 %v1070_v26, %v1054_v40 }
 0x49f   :  { %v1081_v0 = vsel %vm340_vm6, %v1072_v10, %v1074_v4 }
 0x4a0   :  { %1551 = vmatpush1.bf16.msra.mxu0 %v1550_v55  ;;  %1565 = vmatprep.subr.bf16.mxu1 %v1564_v12  ;;  %v1084_v9 = vmul.f32 %v1081_v0, %v1938_v34 }
 0x4a1   :  { %1567 = vmatpush1.bf16.msra.mxu1 %v1566_v6  ;;  %v1076_v13 = vpop.permute.xlu1 %1075 }
 0x4a2   :  { %v1078_v38 = vpop.permute.xlu0 %1077  ;;  %v1080_v11 = vsel %vm340_vm6, %v1074_v4, %v1076_v13 }
 0x4a3   :  { %v1079_v59 = vsel %vm340_vm6, %v1076_v13, %v1078_v38  ;;  %v1082_v60 = vsel %vm340_vm6, %v1078_v38, %v1072_v10  ;;  %v1085_v40 = vmul.f32 %v1080_v11, %v1966_v58  ;;  %v1104_v13 = vmul.f32 %v2319_v16, %v2004_v32 }
 0x4a4   :  { %v1083_v3 = vmul.f32 %v1082_v60, %v1947_v43  ;;  %v1086_v56 = vmul.f32 %v1079_v59, %v1950_v44  ;;  %v1103_v44 = vmul.f32 %v2317_v41, %v1990_v23  ;;  %v1105_v23 = vmul.f32 %v2325_v15, %v1996_v28 }
 0x4a5   :  { %v1088_v2 = vpop.permute.xlu1 %1087  ;;  %v1106_v38 = vmul.f32 %v2327_v19, %v2013_v37 }
 0x4a6   :  { %v1090_v7 = vpop.permute.xlu0 %1089 }
 0x4a7   :  { %v1097_v8 = vsel %vm373_vm7, %v1088_v2, %v1090_v7 }
 0x4a8   :  { %v1100_v17 = vmul.f32 %v1097_v8, %v1942_v35 }
 0x4a9   :  { %v1092_v62 = vpop.permute.xlu1 %1091 }
 0x4aa   :  { %v1096_v46 = vsel %vm373_vm7, %v1090_v7, %v1092_v62  ;;  %v1094_v1 = vpop.permute.xlu0 %1093  ;;  %v1552_v14 = vpack.c.bf16 %v1100_v17, %v1084_v9 }
 0x4ab   :  { %v1101_v5 = vmul.f32 %v1096_v46, %v1955_v47  ;;  %v1095_v34 = vsel %vm373_vm7, %v1092_v62, %v1094_v1  ;;  %v1098_v35 = vsel %vm373_vm7, %v1094_v1, %v1088_v2 }
 0x4ac   :  { %v1099_v57 = vmul.f32 %v1098_v35, %v1960_v53  ;;  %v1102_v27 = vmul.f32 %v1095_v34, %v1963_v54  ;;  %1553 = vmatprep.subr.bf16.mxu0 %v1552_v14 }
 0x4ad   :  { %v1108_v63 = vpop.permute.xlu1 %1107  ;;  %v1570_v10 = vpack.c.bf16 %v1101_v5, %v1085_v40 }
 0x4ae   :  { %v1554_v26 = vpack.c.bf16 %v1099_v57, %v1083_v3  ;;  %v1110_v47 = vpop.permute.xlu0 %1109  ;;  %v1568_v18 = vpack.c.bf16 %v1102_v27, %v1086_v56 }
 0x4af   :  { %v1117_v55 = vsel %vm426_vm8, %v1108_v63, %v1110_v47 }
 0x4b0   :  { %1555 = vmatpush1.bf16.msra.mxu0 %v1554_v26  ;;  %1569 = vmatprep.subr.bf16.mxu1 %v1568_v18  ;;  %v1119_v53 = vmul.f32 %v1117_v55, %v1993_v25 }
 0x4b1   :  { %1571 = vmatpush1.bf16.msra.mxu1 %v1570_v10  ;;  %v1112_v43 = vpop.permute.xlu1 %1111 }
 0x4b2   :  { %v1116_v54 = vsel %vm426_vm8, %v1110_v47, %v1112_v43  ;;  %v1114_v58 = vpop.permute.xlu0 %1113  ;;  %v1558_v2 = vpack.c.bf16 %v1119_v53, %v1103_v44 }
 0x4b3   :  { %v1120_v4 = vmul.f32 %v1116_v54, %v2001_v31  ;;  %v1115_v12 = vsel %vm426_vm8, %v1112_v43, %v1114_v58  ;;  %v1118_v6 = vsel %vm426_vm8, %v1114_v58, %v1108_v63  ;;  %v1466_v43 = vld [vmem:[%s2531_s6 + $0x10] sm:$0xff]  ;;  %s1659_s6 = smov [#allocation6]  }
 0x4b4   :  { %v1121_v25 = vmul.f32 %v1115_v12, %v2007_v33  ;;  %v1122_v41 = vmul.f32 %v1118_v6, %v2010_v36  ;;  %s1439_s9 = sshll.u32 %s1659_s6, 4  ;;  %s1440_s9 = int_to_ptr.vmem [resolvable:$true] %s1439_s9 }
 0x4b5   :  { %v1124_v31 = vpop.permute.xlu1 %1123  ;;  %v1556_v0 = vpack.c.bf16 %v1120_v4, %v1104_v13  ;;  %s1619_s10 = scalar_lea.vmem %s1440_s9, 64  ;;  %p1624_p9 = scmp.lt.s32.totalorder %s1440_s9, %s1440_s9 }
 0x4b6   :  { %v1574_v7 = vpack.c.bf16 %v1121_v25, %v1105_v23  ;;  %v1126_v8 = vpop.permute.xlu0 %1125  ;;  %v1572_v9 = vpack.c.bf16 %v1122_v41, %v1106_v38  ;;  %p1620_p8 = scmp.ne.s32.totalorder %s1440_s9, %s1619_s10  ;;  %p1625_p10 = scmp.lt.s32.totalorder %s1619_s10, %s1619_s10 }
 0x4b7   :  { %1557 = vmatprep.subr.bf16.mxu0 %v1556_v0  ;;  %v1133_v33 = vsel %vm459_vm9, %v1124_v31, %v1126_v8 }
 0x4b8   :  { %1559 = vmatpush1.bf16.msra.mxu0 %v1558_v2  ;;  %1573 = vmatprep.subr.bf16.mxu1 %v1572_v9  ;;  %v1135_v60 = vmul.f32 %v1133_v33, %v2038_v21  ;;  %p1626_p11 = por %p1625_p10, %p1624_p9 }
 0x4b9   :  { %1575 = vmatpush1.bf16.msra.mxu1 %v1574_v7  ;;  %v1128_v32 = vpop.permute.xlu1 %1127 }
 0x4ba   :  { %v1130_v16 = vpop.permute.xlu0 %1129  ;;  %v1132_v37 = vsel %vm459_vm9, %v1126_v8, %v1128_v32  ;;  %p1627_p12 = pnand %p1626_p11, %p1620_p8 }
 0x4bb   :  { %v1131_v19 = vsel %vm459_vm9, %v1128_v32, %v1130_v16  ;;  %v1134_v17 = vsel %vm459_vm9, %v1130_v16, %v1124_v31  ;;  %v1136_v1 = vmul.f32 %v1132_v37, %v2041_v22 }
 0x4bc   :  { %v1137_v35 = vmul.f32 %v1131_v19, %v2049_v29  ;;  %v1138_v21 = vmul.f32 %v1134_v17, %v2059_v50 }
 0x4bd   :  { %v1140_v28 = vpop.permute.xlu1 %1139 }
 0x4be   :  { %v1142_v15 = vpop.permute.xlu0 %1141 }
 0x4bf   :  { %v1149_v36 = vsel %vm492_vm10, %v1140_v28, %v1142_v15 }
 0x4c0   :  { %v1151_v62 = vmul.f32 %v1149_v36, %v2044_v24 }
 0x4c1   :  { %v1144_v59 = vpop.permute.xlu1 %1143 }
 0x4c2   :  { %v1148_v11 = vsel %vm492_vm10, %v1142_v15, %v1144_v59  ;;  %v1146_v46 = vpop.permute.xlu0 %1145  ;;  %v1562_v27 = vpack.c.bf16 %v1151_v62, %v1135_v60 }
 0x4c3   :  { %v1152_v14 = vmul.f32 %v1148_v11, %v2054_v39  ;;  %v1147_v5 = vsel %vm492_vm10, %v1144_v59, %v1146_v46  ;;  %v1150_v34 = vsel %vm492_vm10, %v1146_v46, %v1140_v28 }
 0x4c4   :  { %v1153_v24 = vmul.f32 %v1147_v5, %v2062_v61  ;;  %v1154_v3 = vmul.f32 %v1150_v34, %v2065_v52  ;;  %v1658_v5 = vmov 1966171168  }
 0x4c5   :  { %v1156_v56 = vpop.permute.xlu1 %1155  ;;  %v1560_v57 = vpack.c.bf16 %v1152_v14, %v1136_v1  ;;  %v1406_v34 = vunpack.c.l.s4 %v1658_v5 }
 0x4c6   :  { %v1578_v22 = vpack.c.bf16 %v1153_v24, %v1137_v35  ;;  %v1158_v40 = vpop.permute.xlu0 %1157  ;;  %v1576_v39 = vpack.c.bf16 %v1154_v3, %v1138_v21 }
 0x4c7   :  { %1561 = vmatprep.subr.bf16.mxu0 %v1560_v57  ;;  %v1165_v63 = vsel %vm525_vm11, %v1156_v56, %v1158_v40 }
 0x4c8   :  { %1563 = vmatpush1.bf16.msra.mxu0 %v1562_v27  ;;  %1577 = vmatprep.subr.bf16.mxu1 %v1576_v39  ;;  %v1167_v18 = vmul.f32 %v2094_v42, %v1165_v63  ;;  %v1407_v39 = vunpack.c.0.s8 %v1406_v34 }
 0x4c9   :  { %1579 = vmatpush1.bf16.msra.mxu1 %v1578_v22  ;;  %v1160_v29 = vpop.permute.xlu1 %1159 }
 0x4ca   :  { %v1164_v50 = vsel %vm525_vm11, %v1158_v40, %v1160_v29  ;;  %v1162_v61 = vpop.permute.xlu0 %1161 }
 0x4cb   :  { %v1168_v52 = vmul.f32 %v2089_v20, %v1164_v50  ;;  %v1163_v26 = vsel %vm525_vm11, %v1160_v29, %v1162_v61  ;;  %v1166_v47 = vsel %vm525_vm11, %v1162_v61, %v1156_v56 }
 0x4cc   :  { %v1169_v10 = vmul.f32 %v2101_v30, %v1163_v26  ;;  %v1170_v55 = vmul.f32 %v2106_v45, %v1166_v47 }
 0x4cd   :  { %1199 = vmatprep.subr.mxu0 %v1168_v52 }
 0x4ce   :  { %1200 = vmatpush1.msra.mxu0 %v1167_v18  ;;  %1270 = vmatprep.subr.mxu1 %v1170_v55  ;;  %v1410_v55 = vsub.s32 %v1407_v39, %v1854_v49 }
 0x4cf   :  { %1468 = vmatmul.mubr.msk.f32.vlgmr.msra.gmra.mrb[6].mxu0 %vm557_vm12, %v1466_v43  ;;  %1271 = vmatpush1.msra.mxu1 %v1169_v10 }
 0x4d0   :  { %1469 = vmatmul.mubr.msk.f32.vlgmr.msra.gmra.mrb[6].mxu1 %vm557_vm12, %v1466_v43 }
 0x4da   :  { %v1178_v48 = vpop.permute.xlu1 %1177 }
 0x4db   :  { %v1330_v30 = vpop.permute.xlu0 %1329 }
 0x4de   :  { %v1341_v6 = vpop.permute.xlu1 %1340 }
 0x4df   :  { %v1355_v7 = vpop.permute.xlu0 %1354 }
 0x4e2   :  { %v1389_v24 = vpop.permute.xlu1 %1388 }
 0x4e3   :  { %v1394_v63 = vrot.slane %v1389_v24, %v1857_v51 }
 0x5a2   :  { %v1249_v20 = vpop.f32.mrb[6].mxu0 }
 0x5a3   :  { %v1250_v44 = vadd.f32 %v1249_v20, %v1178_v48  ;;  %v1251_v42 = vpop.f32.mrb[7].mxu0  ;;  %v1320_v53 = vpop.f32.mrb[6].mxu1 }
 0x5a4   :  { %v1252_v54 = vadd.f32 %v1251_v42, %v1178_v48  ;;  %v1321_v45 = vadd.f32 %v1320_v53, %v1178_v48  ;;  %v1322_v58 = vpop.f32.mrb[7].mxu1 }
 0x5a5   :  { %v1332_v4 = vmul.f32 %v1330_v30, %v1250_v44  ;;  %v1323_v12 = vadd.f32 %v1322_v58, %v1178_v48 }
 0x5a6   :  { %v1333_v13 = vmul.f32 %v1330_v30, %v1252_v54  ;;  %v1334_v23 = vmul.f32 %v1330_v30, %v1321_v45 }
 0x5a7   :  { %v1343_v25 = vadd.f32 %v1341_v6, %v1332_v4  ;;  %v1335_v41 = vmul.f32 %v1330_v30, %v1323_v12  ;;  %v2541_v30 = vlaneseq }
 0x5a8   :  { %v1344_v38 = vadd.f32 %v1341_v6, %v1333_v13  ;;  %v1345_v31 = vadd.f32 %v1341_v6, %v1334_v23 }
 0x5a9   :  { %v1347_v0 = vmax.f32 %v1343_v25, 0.0  ;;  %v1346_v2 = vadd.f32 %v1341_v6, %v1335_v41  ;;  %vm1430_vm13 = vcmp.lt.s32.totalorder %v2541_v30, 512 }
 0x5aa   :  { %v1348_v8 = vmax.f32 %v1344_v38, 0.0  ;;  %v1349_v9 = vmax.f32 %v1345_v31, 0.0 }
 0x5ab   :  { %v1357_v32 = vmul.f32 %v1355_v7, %v1347_v0  ;;  %v1350_v16 = vmax.f32 %v1346_v2, 0.0 }
 0x5ac   :  { %v1358_v28 = vmul.f32 %v1355_v7, %v1348_v8  ;;  %v1359_v15 = vmul.f32 %v1355_v7, %v1349_v9 }
 0x5ad   :  { %v1361_v33 = vrot.slane %v1357_v32, 4  ;;  %v1360_v36 = vmul.f32 %v1355_v7, %v1350_v16 }
 0x5ae   :  { %v1367_v37 = vrot.slane %v1358_v28, 4  ;;  %v1373_v19 = vrot.slane %v1359_v15, 4 }
 0x5af   :  { %v1362_v17 = vadd.f32 %v1361_v33, %v1357_v32  ;;  %v1379_v59 = vrot.slane %v1360_v36, 4 }
 0x5b0   :  { %v1368_v60 = vadd.f32 %v1367_v37, %v1358_v28  ;;  %v1374_v62 = vadd.f32 %v1373_v19, %v1359_v15 }
 0x5b1   :  { %v1363_v11 = vrot.slane %v1362_v17, 2  ;;  %v1380_v46 = vadd.f32 %v1379_v59, %v1360_v36 }
 0x5b2   :  { %v1369_v1 = vrot.slane %v1368_v60, 2  ;;  %v1375_v14 = vrot.slane %v1374_v62, 2 }
 0x5b3   :  { %v1364_v35 = vadd.f32 %v1363_v11, %v1362_v17  ;;  %v1381_v21 = vrot.slane %v1380_v46, 2 }
 0x5b4   :  { %v1370_v3 = vadd.f32 %v1369_v1, %v1368_v60  ;;  %v1376_v56 = vadd.f32 %v1375_v14, %v1374_v62 }
 0x5b5   :  { %v1365_v57 = vrot.slane %v1364_v35, 1  ;;  %v1382_v27 = vadd.f32 %v1381_v21, %v1380_v46 }
 0x5b6   :  { %v1371_v22 = vrot.slane %v1370_v3, 1  ;;  %v1377_v40 = vrot.slane %v1376_v56, 1 }
 0x5b7   :  { %v1366_v29 = vadd.f32 %v1365_v57, %v1364_v35  ;;  %v1383_v50 = vrot.slane %v1382_v27, 1 }
 0x5b8   :  { %v1372_v61 = vadd.f32 %v1371_v22, %v1370_v3  ;;  %v1378_v52 = vadd.f32 %v1377_v40, %v1376_v56 }
 0x5b9   :  { %v1384_v26 = vadd.f32 %v1383_v50, %v1382_v27  ;;  %v1395_v47 = vadd.f32 %v1394_v63, %v1366_v29 }
 0x5ba   :  { %v1396_v18 = vadd.f32 %v1394_v63, %v1372_v61  ;;  %v1397_v10 = vadd.f32 %v1394_v63, %v1378_v52 }
 0x5bb   :  { %v1398_v43 = vadd.f32 %v1394_v63, %v1384_v26 }
 0x5bc   :  { %v1403_v48 = vcombine.low %v1395_v47, %v1396_v18 }
 0x5bd   :  { %v1404_v20 = vcombine.low %v1397_v10, %v1398_v43 }
 0x5be   :  { %v1411_v44 = vrot.slane %v1403_v48, %v1410_v55 }
 0x5bf   :  { %v1418_v42 = vrot.slane %v1404_v20, %v1410_v55 }
 0x5c1   :  { %v1419_v53 = vcombine.low %v1411_v44, %v1418_v42 }
 0x5c3   :  { %v1426_v51 = vrot.slane %v1419_v53, %v1410_v55 }
 0x5c5   :  { %1432 = vst.msk [vmem:[#allocation6] sm:$0xf] %vm1430_vm13, %v1426_v51 }
 0x5c6   :  { %1630 = shalt.err (!%p1627_p12)
}
 0x5c7   :  { %s1631_s29 = scalar_lea.hbm %s2537_s12, 64 }
 0x5c8   :  { %p1632_p13 = scmp.ne.s32.totalorder %s2537_s12, %s1631_s29  ;;  %p1635_p0 = scmp.lt.u32.totalorder %s1631_s29, %s2537_s12 }
 0x5ca   :  { %p1637_p1 = pnand %p1635_p0, %p1632_p13 }
 0x5cc   :  { %1640 = shalt.err (!%p1637_p1)
}
 0x5cd   :  { %1442 = dma.vmem_to_hbm [thread:$0]  %s1440_s9, 64, %s2537_s12, [#allocation5]  }
 0x5ce   :  { %1643 = dma.done.wait [#allocation5], 64  }
 0x5cf   :  { %1644 = vsyncadd [#allocation5], 4294967232 }
 0x5d0   :  { %1446 = vsyncpa [#allocation4], 1 }
 0x5d1   :  { %1447 = vsyncpa [#allocation5], 1 }

</bundles_post_ra>
